<compile_context>
chip_gen: v7x
topology: tpu7x:2x2x1
jax: 0.10.0
libtpu: 0.0.40
codegen_flags: <defaults>
</compile_context>

<pallas_src>
from functools import partial

import jax
import jax.numpy as jnp
from jax import lax
from jax.experimental import pallas as pl
from jax.experimental.pallas import tpu as pltpu

GROMOV_ITERS = 15      # gromov_iters
SINK_ITERS = 15        # psinkhorn_iters
SINK_TAU = 0.1         # psinkhorn_tau


def _gw_kernel(xs_ref, kps_ref, f1_ref, f1t_ref, f2_ref, f2t_ref, out_ref, *,
               tb, n2, n2_valid, nch, per_batch_f2):
    """One batch tile: 15 Gromov iterations x (cost matrix + 15-iter Sinkhorn),
    entirely in VMEM on a lane-dense (n1, tb*n2) slab."""
    f32 = jnp.float32
    n1, L = xs_ref.shape
    tbc = tb // nch              # batches per Sinkhorn chunk
    Lc = tbc * n2                # lanes per Sinkhorn chunk (128-aligned)
    padded = n2_valid < n2

    def _recip(x):
        # EUP approx reciprocal + one Newton step: divides off the VPU path.
        r = pl.reciprocal(x, approx=True)
        return r * (2.0 - x * r)

    # ---- loop-invariant helpers (small, built once per grid step) ----------
    # Chunk-local segment matrix Mc[j, l] = 1 iff lane l belongs to local
    # batch j.  rank-tbc factorization of the old dense (L,L) segment-sum.
    if tbc > 1:
        lj = lax.broadcasted_iota(jnp.int32, (tbc, Lc), 1)
        jj = lax.broadcasted_iota(jnp.int32, (tbc, Lc), 0)
        Mc = ((lj >= jj * n2) & (lj < (jj + 1) * n2)).astype(f32)
    else:
        Mc = None
    if padded:
        lane_c = lax.broadcasted_iota(jnp.int32, (1, Lc), 1)
        valid_c = jnp.zeros((1, Lc), f32)
        for j in range(tbc):
            valid_c = valid_c + ((lane_c >= j * n2)
                                 & (lane_c < j * n2 + n2_valid)).astype(f32)
        pad_c = 1.0 - valid_c
    else:
        valid_c = None
        pad_c = None

    Xs0 = xs_ref[...].astype(f32)

    def gromov_body(_, Xs):
        # ------- C_raw = Kp + F1 X F2 + F1^T X F2^T  (per batch segment) ----
        if per_batch_f2:
            # n2 is a multiple of 128: static, lane-aligned per-batch slices,
            # no block-diagonal slabs and no mask multiplies.
            pieces = []
            for b in range(tb):
                lo, hi = b * n2, (b + 1) * n2
                Xb = Xs[:, lo:hi]
                Ab = jnp.dot(Xb, f2_ref[b], preferred_element_type=f32)
                Bb = jnp.dot(Xb, f2t_ref[b], preferred_element_type=f32)
                Cb = (kps_ref[:, lo:hi].astype(f32)
                      + jnp.dot(f1_ref[b], Ab, preferred_element_type=f32)
                      + jnp.dot(f1t_ref[b], Bb, preferred_element_type=f32))
                pieces.append(Cb)
            C = pieces[0] if tb == 1 else jnp.concatenate(pieces, axis=1)
        else:
            # small n2: one slab matmul against block-diagonal F2 / F2^T,
            # tiny masked per-batch F1 left-multiplies.
            A = jnp.dot(Xs, f2_ref[...], preferred_element_type=f32)
            B = jnp.dot(Xs, f2t_ref[...], preferred_element_type=f32)
            C = kps_ref[...].astype(f32)
            lane = lax.broadcasted_iota(jnp.int32, (1, L), 1)
            for b in range(tb):
                mask_b = ((lane >= b * n2) & (lane < (b + 1) * n2)).astype(f32)
                C = C + jnp.dot(f1_ref[b], A * mask_b,
                                preferred_element_type=f32)
                C = C + jnp.dot(f1t_ref[b], B * mask_b,
                                preferred_element_type=f32)

        # ------- fused negate + Linf normalize + /tau -> per-batch scale ----
        # hoisted sublane reduce: one (n1,L) column-max, then tb (1,L) maxes.
        colmax = jnp.max(jnp.abs(C), axis=0, keepdims=True)       # (1, L)
        lane = lax.broadcasted_iota(jnp.int32, (1, L), 1)
        scale = jnp.zeros((1, L), f32)
        for b in range(tb):
            mask_b = ((lane >= b * n2) & (lane < (b + 1) * n2)).astype(f32)
            m_b = jnp.maximum(jnp.max(colmax * mask_b), 1e-30)
            scale = scale + mask_b * (1.0 / (SINK_TAU * m_b))
        X_exp = jnp.exp(C * scale)          # == exp(-(-C/m)/tau)

        # ------- partial Sinkhorn: nch independent chains, fully unrolled ---
        chunks = []
        for c in range(nch):
            Xc = X_exp[:, c * Lc:(c + 1) * Lc]
            if padded:
                Xc = Xc * valid_c           # zero pad lanes (exp(0)=1 -> 0)
            chunks.append(Xc)

        def sink_body(_, carry):
            new = []
            for c in range(nch):            # independent chains -> dovetail
                lu_c, rv_c = carry[c]
                Xc = chunks[c]
                Y = Xc * rv_c
                if tbc == 1:
                    rs = jnp.sum(Y, axis=1, keepdims=True)            # (n1,1)
                else:
                    rs_s = jnp.einsum('il,jl->ij', Y, Mc,
                                      preferred_element_type=f32)     # (n1,tbc)
                    rs = jnp.dot(rs_s, Mc, preferred_element_type=f32)
                lu_c = _recip(rs)
                cs = jnp.sum(Xc * lu_c, axis=0, keepdims=True)        # (1,Lc)
                if padded:
                    cs = cs + pad_c         # keep recip finite on pad lanes
                rv_c = jnp.minimum(_recip(cs), 1.0)
                new.append((lu_c, rv_c))
            return tuple(new)

        init = tuple(
            (jnp.ones((n1, 1) if tbc == 1 else (n1, Lc), f32),
             jnp.ones((1, Lc), f32))
            for _ in range(nch))
        fin = lax.fori_loop(0, SINK_ITERS, sink_body, init, unroll=True)

        # diag(lu) @ X_exp @ diag(rv), lane-dense.
        outs = [fin[c][0] * chunks[c] * fin[c][1] for c in range(nch)]
        return outs[0] if nch == 1 else jnp.concatenate(outs, axis=1)

    Xf = lax.fori_loop(0, GROMOV_ITERS, gromov_body, Xs0)
    out_ref[...] = Xf.astype(out_ref.dtype)


def _round_up(x, m):
    return (x + m - 1) // m * m


def _choose_tiling(bs, n1, n2, vmem_budget=20 << 20, max_L=2048):
    """Pick (tb, n2_padded, per_batch_f2, n_chunks, per-step VMEM estimate)."""

    def step_bytes(tb, n2p, per_batch):
        L = tb * n2p
        f2_elems = (2 * tb * n2p * n2p) if per_batch else (2 * L * L)
        dbuf = 2 * (2 * n1 * L + 2 * tb * n1 * n1 + f2_elems + n1 * L)
        live = 12 * n1 * L + 2 * L
        return 4 * (dbuf + live)

    def candidates(n2p, per_batch):
        out = []
        for tb in range(1, bs + 1):
            if bs % tb:
                continue
            L = tb * n2p
            if L % 128 or L > max_L:
                continue
            if step_bytes(tb, n2p, per_batch) > vmem_budget:
                continue
            nb = bs // tb
            # prefer: nb >= 2 (megacore / 2 TCs), 256-wide slabs (v6e/v7x
            # MXU columns), then the largest slab that fits.
            out.append((nb >= 2, L % 256 == 0, L, tb))
        return out

    options = []
    if n2 % 128 == 0:
        options.append((n2, True))
    else:
        if n2 < 128:
            options.append((n2, False))                 # block-diag, no pad
        options.append((_round_up(n2, 128), True))      # pad lanes, per-batch F2
    for n2p, per_batch in options:
        cands = candidates(n2p, per_batch)
        if cands:
            cands.sort(reverse=True)
            tb = cands[0][3]
            nch = 2 if (tb % 2 == 0 and ((tb // 2) * n2p) % 128 == 0) else 1
            return tb, n2p, per_batch, nch, step_bytes(tb, n2p, per_batch)
    raise ValueError("no feasible batch tiling fits the VMEM budget")


def gromov_wasserstein(X, F1, F2, Kp):
    bs, n1, n2 = X.shape
    assert F1.shape == (bs, n1, n1)
    assert F2.shape == (bs, n2, n2)
    assert Kp.shape == (bs, n1, n2)
    assert n1 <= n2, "module semantics assume n1 <= n2 (Sinkhorn would transpose)"

    tb, n2p, per_batch, nch, step_est = _choose_tiling(bs, n1, n2)
    nb = bs // tb
    L = tb * n2p
    f32 = jnp.float32

    Xf = X.astype(f32)
    Kpf = Kp.astype(f32)
    F2f = F2.astype(f32)
    if n2p != n2:
        pad = n2p - n2
        Xf = jnp.pad(Xf, ((0, 0), (0, 0), (0, pad)))
        Kpf = jnp.pad(Kpf, ((0, 0), (0, 0), (0, pad)))
        F2f = jnp.pad(F2f, ((0, 0), (0, pad), (0, pad)))

    # Lane-dense slabs: batch folded into the lane axis.
    Xs = jnp.transpose(Xf, (1, 0, 2)).reshape(n1, bs * n2p)
    Kps = jnp.transpose(Kpf, (1, 0, 2)).reshape(n1, bs * n2p)
    F1f = F1.astype(f32)
    F1T = jnp.swapaxes(F1f, 1, 2)
    F2T = jnp.swapaxes(F2f, 1, 2)

    if per_batch:
        f2_in, f2t_in = F2f, F2T
        f2_spec = pl.BlockSpec((tb, n2p, n2p), lambda g: (g, 0, 0))
        f2t_spec = pl.BlockSpec((tb, n2p, n2p), lambda g: (g, 0, 0))
    else:
        # Block-diagonal F2 / F2^T per batch tile (host-side, only small n2).
        eye_tb = jnp.eye(tb, dtype=f32)
        F2g = F2f.reshape(nb, tb, n2p, n2p)
        F2gT = F2T.reshape(nb, tb, n2p, n2p)
        f2_in = jnp.einsum('gbij,bc->gbicj', F2g, eye_tb).reshape(nb, L, L)
        f2t_in = jnp.einsum('gbij,bc->gbicj', F2gT, eye_tb).reshape(nb, L, L)
        f2_spec = pl.BlockSpec((None, L, L), lambda g: (g, 0, 0))
        f2t_spec = pl.BlockSpec((None, L, L), lambda g: (g, 0, 0))

    flops = int(nb * GROMOV_ITERS * (
        tb * (4 * n1 * n2p * n2p + 4 * n1 * n1 * n2p)
        + SINK_ITERS * 4 * n1 * L * max(tb // nch, 1)))
    cost = pl.CostEstimate(
        flops=flops,
        transcendentals=int(nb * GROMOV_ITERS * n1 * L * (1 + 2 * SINK_ITERS)),
        bytes_accessed=int(4 * (3 * n1 * bs * n2p + 4 * bs * n1 * n1
                                + (2 * bs * n2p * n2p if per_batch
                                   else 2 * nb * L * L))),
    )
    vmem_limit = int(min(max(2 * step_est, 32 << 20), 48 << 20))

    out_slab = pl.pallas_call(
        partial(_gw_kernel, tb=tb, n2=n2p, n2_valid=n2, nch=nch,
                per_batch_f2=per_batch),
        out_shape=jax.ShapeDtypeStruct((n1, bs * n2p), f32),
        grid_spec=pltpu.PrefetchScalarGridSpec(
            num_scalar_prefetch=0,
            grid=(nb,),
            in_specs=[
                pl.BlockSpec((n1, L), lambda g: (0, g)),          # X slab
                pl.BlockSpec((n1, L), lambda g: (0, g)),          # Kp slab
                pl.BlockSpec((tb, n1, n1), lambda g: (g, 0, 0)),  # F1
                pl.BlockSpec((tb, n1, n1), lambda g: (g, 0, 0)),  # F1^T
                f2_spec,                                          # F2 variant
                f2t_spec,                                         # F2^T variant
            ],
            out_specs=pl.BlockSpec((n1, L), lambda g: (0, g)),
        ),
        compiler_params=pltpu.CompilerParams(
            dimension_semantics=("parallel",),
            vmem_limit_bytes=vmem_limit),
        cost_estimate=cost,
    )(Xs, Kps, F1f, F1T, f2_in, f2t_in)

    out = out_slab.reshape(n1, bs, n2p).transpose(1, 0, 2)
    if n2p != n2:
        out = out[:, :, :n2]
    return out.astype(X.dtype)


def _reference(X, F1, F2, Kp):
    """Plain-JAX port of the PyTorch forward (for correctness check)."""
    for _ in range(GROMOV_ITERS):
        C = Kp + jnp.einsum('bij,bjk,bkl->bil', F1, X, F2)
        C = C + jnp.einsum('bji,bjk,blk->bil', F1, X, F2)
        C = -C
        m = jnp.max(jnp.abs(C.reshape(C.shape[0], -1)), axis=1)[:, None, None]
        C = C / m
        X_exp = jnp.exp(-C / SINK_TAU)
        bs, n1, n2 = X_exp.shape
        rv = jnp.ones((bs, n2, 1), X.dtype)
        lu = jnp.ones((bs, n1, 1), X.dtype)
        for _ in range(SINK_ITERS):
            lu = 1.0 / jnp.matmul(X_exp, rv)
            rv = 1.0 / jnp.matmul(jnp.swapaxes(X_exp, 1, 2), lu)
            rv = jnp.minimum(rv, 1.0)
        X = lu * X_exp * jnp.swapaxes(rv, 1, 2)
    return X


if __name__ == "__main__":
    def _run_case(bs, n1, n2):
        key = jax.random.PRNGKey(0)
        kx, k1, k2, kp = jax.random.split(key, 4)
        X = jax.random.normal(kx, (bs, n1, n2), dtype=jnp.float32)
        F1 = jax.random.normal(k1, (bs, n1, n1), dtype=jnp.float32)
        F2 = jax.random.normal(k2, (bs, n2, n2), dtype=jnp.float32)
        Kp = jax.random.normal(kp, (bs, n1, n2), dtype=jnp.float32)

        out = jax.block_until_ready(jax.jit(gromov_wasserstein)(X, F1, F2, Kp))
        ref = jax.block_until_ready(_reference(X, F1, F2, Kp))

        assert out.shape == (bs, n1, n2)
        assert bool(jnp.all(jnp.isfinite(out)))
        max_err = float(jnp.max(jnp.abs(out - ref)))
        assert max_err < 1e-2, f"mismatch vs reference {(bs, n1, n2)}: {max_err}"

    _run_case(16, 8, 16)    # small n2: block-diag F2, M^T M factorized Sinkhorn
    _run_case(4, 8, 128)    # aligned n2: per-batch F2, 2 interleaved chains
    _run_case(3, 8, 16)     # no 128-aligned divisor: lane-padding path

    print("KERNEL_OK")
</pallas_src>

<mosaic_0001>
module attributes {stable_mosaic.version = 11 : i64} {
  func.func @_gw_kernel(%arg0: i32, %arg1: memref<8x128xf32, #tpu.memory_space<vmem>>, %arg2: memref<8x128xf32, #tpu.memory_space<vmem>>, %arg3: memref<8x8x8xf32, #tpu.memory_space<vmem>>, %arg4: memref<8x8x8xf32, #tpu.memory_space<vmem>>, %arg5: memref<1x128x128xf32, #tpu.memory_space<vmem>>, %arg6: memref<1x128x128xf32, #tpu.memory_space<vmem>>, %arg7: memref<8x128xf32, #tpu.memory_space<vmem>>) attributes {dimension_semantics = [#tpu.dimension_semantics<parallel>], iteration_bounds = array<i64: 2>, scalar_prefetch = 0 : i64, scratch_operands = 0 : i64, tpu.core_type = #tpu.core_type<tc>, window_params = [{transform_indices = @transform_0, window_bounds = array<i64: 8, 128>}, {transform_indices = @transform_1, window_bounds = array<i64: 8, 128>}, {transform_indices = @transform_2, window_bounds = array<i64: 8, 8, 8>}, {transform_indices = @transform_3, window_bounds = array<i64: 8, 8, 8>}, {transform_indices = @transform_4, window_bounds = array<i64: 1, 128, 128>}, {transform_indices = @transform_5, window_bounds = array<i64: 1, 128, 128>}, {transform_indices = @transform_6, window_bounds = array<i64: 8, 128>}]} {
    %0 = tpu.iota {dimensions = array<i32: 1>} : vector<8x128xi32>
    %1 = tpu.iota {dimensions = array<i32: 0>} : vector<8x128xi32>
    %c16_i32 = arith.constant 16 : i32
    %2 = vector.broadcast %c16_i32 : i32 to vector<8x128xi32>
    %3 = arith.muli %1, %2 : vector<8x128xi32>
    %4 = arith.cmpi sge, %0, %3 : vector<8x128xi32>
    %c1_i32 = arith.constant 1 : i32
    %5 = vector.broadcast %c1_i32 : i32 to vector<8x128xi32>
    %6 = arith.addi %1, %5 : vector<8x128xi32>
    %c16_i32_0 = arith.constant 16 : i32
    %7 = vector.broadcast %c16_i32_0 : i32 to vector<8x128xi32>
    %8 = arith.muli %6, %7 : vector<8x128xi32>
    %9 = arith.cmpi slt, %0, %8 : vector<8x128xi32>
    %10 = arith.andi %4, %9 : vector<8x128xi1>
    %11 = arith.extui %10 : vector<8x128xi1> to vector<8x128xi32>
    %12 = arith.sitofp %11 : vector<8x128xi32> to vector<8x128xf32>
    %c0 = arith.constant 0 : index
    %c0_1 = arith.constant 0 : index
    %13 = vector.load %arg1[%c0, %c0_1] : memref<8x128xf32, #tpu.memory_space<vmem>>, vector<8x128xf32>
    %c0_i32 = arith.constant 0 : i32
    %c15_i32 = arith.constant 15 : i32
    %14 = arith.addi %c0_i32, %c15_i32 : i32
    %c1_i32_2 = arith.constant 1 : i32
    %15 = scf.for %arg8 = %c0_i32 to %14 step %c1_i32_2 iter_args(%arg9 = %13) -> (vector<8x128xf32>)  : i32 {
      %c0_5 = arith.constant 0 : index
      %c0_6 = arith.constant 0 : index
      %c0_7 = arith.constant 0 : index
      %17 = vector.load %arg5[%c0_5, %c0_6, %c0_7] : memref<1x128x128xf32, #tpu.memory_space<vmem>>, vector<1x128x128xf32>
      %18 = vector.shape_cast %17 : vector<1x128x128xf32> to vector<128x128xf32>
      %cst = arith.constant dense<0.000000e+00> : vector<8x128xf32>
      %19 = tpu.matmul %arg9, %18, %cst {dimension_numbers = #tpu.dot_dimension_numbers<[1], [0], [0], [1], [0, 0, 1, 1], [], []>} : vector<8x128xf32>, vector<128x128xf32>, vector<8x128xf32> -> vector<8x128xf32>
      %c0_8 = arith.constant 0 : index
      %c0_9 = arith.constant 0 : index
      %c0_10 = arith.constant 0 : index
      %20 = vector.load %arg6[%c0_8, %c0_9, %c0_10] : memref<1x128x128xf32, #tpu.memory_space<vmem>>, vector<1x128x128xf32>
      %21 = vector.shape_cast %20 : vector<1x128x128xf32> to vector<128x128xf32>
      %cst_11 = arith.constant dense<0.000000e+00> : vector<8x128xf32>
      %22 = tpu.matmul %arg9, %21, %cst_11 {dimension_numbers = #tpu.dot_dimension_numbers<[1], [0], [0], [1], [0, 0, 1, 1], [], []>} : vector<8x128xf32>, vector<128x128xf32>, vector<8x128xf32> -> vector<8x128xf32>
      %c0_12 = arith.constant 0 : index
      %c0_13 = arith.constant 0 : index
      %23 = vector.load %arg2[%c0_12, %c0_13] : memref<8x128xf32, #tpu.memory_space<vmem>>, vector<8x128xf32>
      %24 = tpu.iota {dimensions = array<i32: 1>} : vector<1x128xi32>
      %c0_i32_14 = arith.constant 0 : i32
      %25 = vector.broadcast %c0_i32_14 : i32 to vector<1x128xi32>
      %26 = arith.cmpi sge, %24, %25 : vector<1x128xi32>
      %c16_i32_15 = arith.constant 16 : i32
      %27 = vector.broadcast %c16_i32_15 : i32 to vector<1x128xi32>
      %28 = arith.cmpi slt, %24, %27 : vector<1x128xi32>
      %29 = arith.andi %26, %28 : vector<1x128xi1>
      %30 = arith.extui %29 : vector<1x128xi1> to vector<1x128xi32>
      %31 = arith.sitofp %30 : vector<1x128xi32> to vector<1x128xf32>
      %c0_16 = arith.constant 0 : index
      %c0_17 = arith.constant 0 : index
      %c0_18 = arith.constant 0 : index
      %32 = vector.load %arg3[%c0_16, %c0_17, %c0_18] : memref<8x8x8xf32, #tpu.memory_space<vmem>>, vector<1x8x8xf32>
      %33 = vector.shape_cast %32 : vector<1x8x8xf32> to vector<8x8xf32>
      %34 = vector.broadcast %31 : vector<1x128xf32> to vector<8x128xf32>
      %35 = arith.mulf %19, %34 : vector<8x128xf32>
      %cst_19 = arith.constant dense<0.000000e+00> : vector<8x128xf32>
      %36 = tpu.matmul %33, %35, %cst_19 {dimension_numbers = #tpu.dot_dimension_numbers<[1], [0], [0], [1], [0, 0, 1, 1], [], []>} : vector<8x8xf32>, vector<8x128xf32>, vector<8x128xf32> -> vector<8x128xf32>
      %37 = arith.addf %23, %36 : vector<8x128xf32>
      %c0_20 = arith.constant 0 : index
      %c0_21 = arith.constant 0 : index
      %c0_22 = arith.constant 0 : index
      %38 = vector.load %arg4[%c0_20, %c0_21, %c0_22] : memref<8x8x8xf32, #tpu.memory_space<vmem>>, vector<1x8x8xf32>
      %39 = vector.shape_cast %38 : vector<1x8x8xf32> to vector<8x8xf32>
      %40 = vector.broadcast %31 : vector<1x128xf32> to vector<8x128xf32>
      %41 = arith.mulf %22, %40 : vector<8x128xf32>
      %cst_23 = arith.constant dense<0.000000e+00> : vector<8x128xf32>
      %42 = tpu.matmul %39, %41, %cst_23 {dimension_numbers = #tpu.dot_dimension_numbers<[1], [0], [0], [1], [0, 0, 1, 1], [], []>} : vector<8x8xf32>, vector<8x128xf32>, vector<8x128xf32> -> vector<8x128xf32>
      %43 = arith.addf %37, %42 : vector<8x128xf32>
      %c16_i32_24 = arith.constant 16 : i32
      %44 = vector.broadcast %c16_i32_24 : i32 to vector<1x128xi32>
      %45 = arith.cmpi sge, %24, %44 : vector<1x128xi32>
      %c32_i32 = arith.constant 32 : i32
      %46 = vector.broadcast %c32_i32 : i32 to vector<1x128xi32>
      %47 = arith.cmpi slt, %24, %46 : vector<1x128xi32>
      %48 = arith.andi %45, %47 : vector<1x128xi1>
      %49 = arith.extui %48 : vector<1x128xi1> to vector<1x128xi32>
      %50 = arith.sitofp %49 : vector<1x128xi32> to vector<1x128xf32>
      %c1 = arith.constant 1 : index
      %c0_25 = arith.constant 0 : index
      %c0_26 = arith.constant 0 : index
      %51 = vector.load %arg3[%c1, %c0_25, %c0_26] : memref<8x8x8xf32, #tpu.memory_space<vmem>>, vector<1x8x8xf32>
      %52 = vector.shape_cast %51 : vector<1x8x8xf32> to vector<8x8xf32>
      %53 = vector.broadcast %50 : vector<1x128xf32> to vector<8x128xf32>
      %54 = arith.mulf %19, %53 : vector<8x128xf32>
      %cst_27 = arith.constant dense<0.000000e+00> : vector<8x128xf32>
      %55 = tpu.matmul %52, %54, %cst_27 {dimension_numbers = #tpu.dot_dimension_numbers<[1], [0], [0], [1], [0, 0, 1, 1], [], []>} : vector<8x8xf32>, vector<8x128xf32>, vector<8x128xf32> -> vector<8x128xf32>
      %56 = arith.addf %43, %55 : vector<8x128xf32>
      %c1_28 = arith.constant 1 : index
      %c0_29 = arith.constant 0 : index
      %c0_30 = arith.constant 0 : index
      %57 = vector.load %arg4[%c1_28, %c0_29, %c0_30] : memref<8x8x8xf32, #tpu.memory_space<vmem>>, vector<1x8x8xf32>
      %58 = vector.shape_cast %57 : vector<1x8x8xf32> to vector<8x8xf32>
      %59 = vector.broadcast %50 : vector<1x128xf32> to vector<8x128xf32>
      %60 = arith.mulf %22, %59 : vector<8x128xf32>
      %cst_31 = arith.constant dense<0.000000e+00> : vector<8x128xf32>
      %61 = tpu.matmul %58, %60, %cst_31 {dimension_numbers = #tpu.dot_dimension_numbers<[1], [0], [0], [1], [0, 0, 1, 1], [], []>} : vector<8x8xf32>, vector<8x128xf32>, vector<8x128xf32> -> vector<8x128xf32>
      %62 = arith.addf %56, %61 : vector<8x128xf32>
      %c32_i32_32 = arith.constant 32 : i32
      %63 = vector.broadcast %c32_i32_32 : i32 to vector<1x128xi32>
      %64 = arith.cmpi sge, %24, %63 : vector<1x128xi32>
      %c48_i32 = arith.constant 48 : i32
      %65 = vector.broadcast %c48_i32 : i32 to vector<1x128xi32>
      %66 = arith.cmpi slt, %24, %65 : vector<1x128xi32>
      %67 = arith.andi %64, %66 : vector<1x128xi1>
      %68 = arith.extui %67 : vector<1x128xi1> to vector<1x128xi32>
      %69 = arith.sitofp %68 : vector<1x128xi32> to vector<1x128xf32>
      %c2 = arith.constant 2 : index
      %c0_33 = arith.constant 0 : index
      %c0_34 = arith.constant 0 : index
      %70 = vector.load %arg3[%c2, %c0_33, %c0_34] : memref<8x8x8xf32, #tpu.memory_space<vmem>>, vector<1x8x8xf32>
      %71 = vector.shape_cast %70 : vector<1x8x8xf32> to vector<8x8xf32>
      %72 = vector.broadcast %69 : vector<1x128xf32> to vector<8x128xf32>
      %73 = arith.mulf %19, %72 : vector<8x128xf32>
      %cst_35 = arith.constant dense<0.000000e+00> : vector<8x128xf32>
      %74 = tpu.matmul %71, %73, %cst_35 {dimension_numbers = #tpu.dot_dimension_numbers<[1], [0], [0], [1], [0, 0, 1, 1], [], []>} : vector<8x8xf32>, vector<8x128xf32>, vector<8x128xf32> -> vector<8x128xf32>
      %75 = arith.addf %62, %74 : vector<8x128xf32>
      %c2_36 = arith.constant 2 : index
      %c0_37 = arith.constant 0 : index
      %c0_38 = arith.constant 0 : index
      %76 = vector.load %arg4[%c2_36, %c0_37, %c0_38] : memref<8x8x8xf32, #tpu.memory_space<vmem>>, vector<1x8x8xf32>
      %77 = vector.shape_cast %76 : vector<1x8x8xf32> to vector<8x8xf32>
      %78 = vector.broadcast %69 : vector<1x128xf32> to vector<8x128xf32>
      %79 = arith.mulf %22, %78 : vector<8x128xf32>
      %cst_39 = arith.constant dense<0.000000e+00> : vector<8x128xf32>
      %80 = tpu.matmul %77, %79, %cst_39 {dimension_numbers = #tpu.dot_dimension_numbers<[1], [0], [0], [1], [0, 0, 1, 1], [], []>} : vector<8x8xf32>, vector<8x128xf32>, vector<8x128xf32> -> vector<8x128xf32>
      %81 = arith.addf %75, %80 : vector<8x128xf32>
      %c48_i32_40 = arith.constant 48 : i32
      %82 = vector.broadcast %c48_i32_40 : i32 to vector<1x128xi32>
      %83 = arith.cmpi sge, %24, %82 : vector<1x128xi32>
      %c64_i32 = arith.constant 64 : i32
      %84 = vector.broadcast %c64_i32 : i32 to vector<1x128xi32>
      %85 = arith.cmpi slt, %24, %84 : vector<1x128xi32>
      %86 = arith.andi %83, %85 : vector<1x128xi1>
      %87 = arith.extui %86 : vector<1x128xi1> to vector<1x128xi32>
      %88 = arith.sitofp %87 : vector<1x128xi32> to vector<1x128xf32>
      %c3 = arith.constant 3 : index
      %c0_41 = arith.constant 0 : index
      %c0_42 = arith.constant 0 : index
      %89 = vector.load %arg3[%c3, %c0_41, %c0_42] : memref<8x8x8xf32, #tpu.memory_space<vmem>>, vector<1x8x8xf32>
      %90 = vector.shape_cast %89 : vector<1x8x8xf32> to vector<8x8xf32>
      %91 = vector.broadcast %88 : vector<1x128xf32> to vector<8x128xf32>
      %92 = arith.mulf %19, %91 : vector<8x128xf32>
      %cst_43 = arith.constant dense<0.000000e+00> : vector<8x128xf32>
      %93 = tpu.matmul %90, %92, %cst_43 {dimension_numbers = #tpu.dot_dimension_numbers<[1], [0], [0], [1], [0, 0, 1, 1], [], []>} : vector<8x8xf32>, vector<8x128xf32>, vector<8x128xf32> -> vector<8x128xf32>
      %94 = arith.addf %81, %93 : vector<8x128xf32>
      %c3_44 = arith.constant 3 : index
      %c0_45 = arith.constant 0 : index
      %c0_46 = arith.constant 0 : index
      %95 = vector.load %arg4[%c3_44, %c0_45, %c0_46] : memref<8x8x8xf32, #tpu.memory_space<vmem>>, vector<1x8x8xf32>
      %96 = vector.shape_cast %95 : vector<1x8x8xf32> to vector<8x8xf32>
      %97 = vector.broadcast %88 : vector<1x128xf32> to vector<8x128xf32>
      %98 = arith.mulf %22, %97 : vector<8x128xf32>
      %cst_47 = arith.constant dense<0.000000e+00> : vector<8x128xf32>
      %99 = tpu.matmul %96, %98, %cst_47 {dimension_numbers = #tpu.dot_dimension_numbers<[1], [0], [0], [1], [0, 0, 1, 1], [], []>} : vector<8x8xf32>, vector<8x128xf32>, vector<8x128xf32> -> vector<8x128xf32>
      %100 = arith.addf %94, %99 : vector<8x128xf32>
      %c64_i32_48 = arith.constant 64 : i32
      %101 = vector.broadcast %c64_i32_48 : i32 to vector<1x128xi32>
      %102 = arith.cmpi sge, %24, %101 : vector<1x128xi32>
      %c80_i32 = arith.constant 80 : i32
      %103 = vector.broadcast %c80_i32 : i32 to vector<1x128xi32>
      %104 = arith.cmpi slt, %24, %103 : vector<1x128xi32>
      %105 = arith.andi %102, %104 : vector<1x128xi1>
      %106 = arith.extui %105 : vector<1x128xi1> to vector<1x128xi32>
      %107 = arith.sitofp %106 : vector<1x128xi32> to vector<1x128xf32>
      %c4 = arith.constant 4 : index
      %c0_49 = arith.constant 0 : index
      %c0_50 = arith.constant 0 : index
      %108 = vector.load %arg3[%c4, %c0_49, %c0_50] : memref<8x8x8xf32, #tpu.memory_space<vmem>>, vector<1x8x8xf32>
      %109 = vector.shape_cast %108 : vector<1x8x8xf32> to vector<8x8xf32>
      %110 = vector.broadcast %107 : vector<1x128xf32> to vector<8x128xf32>
      %111 = arith.mulf %19, %110 : vector<8x128xf32>
      %cst_51 = arith.constant dense<0.000000e+00> : vector<8x128xf32>
      %112 = tpu.matmul %109, %111, %cst_51 {dimension_numbers = #tpu.dot_dimension_numbers<[1], [0], [0], [1], [0, 0, 1, 1], [], []>} : vector<8x8xf32>, vector<8x128xf32>, vector<8x128xf32> -> vector<8x128xf32>
      %113 = arith.addf %100, %112 : vector<8x128xf32>
      %c4_52 = arith.constant 4 : index
      %c0_53 = arith.constant 0 : index
      %c0_54 = arith.constant 0 : index
      %114 = vector.load %arg4[%c4_52, %c0_53, %c0_54] : memref<8x8x8xf32, #tpu.memory_space<vmem>>, vector<1x8x8xf32>
      %115 = vector.shape_cast %114 : vector<1x8x8xf32> to vector<8x8xf32>
      %116 = vector.broadcast %107 : vector<1x128xf32> to vector<8x128xf32>
      %117 = arith.mulf %22, %116 : vector<8x128xf32>
      %cst_55 = arith.constant dense<0.000000e+00> : vector<8x128xf32>
      %118 = tpu.matmul %115, %117, %cst_55 {dimension_numbers = #tpu.dot_dimension_numbers<[1], [0], [0], [1], [0, 0, 1, 1], [], []>} : vector<8x8xf32>, vector<8x128xf32>, vector<8x128xf32> -> vector<8x128xf32>
      %119 = arith.addf %113, %118 : vector<8x128xf32>
      %c80_i32_56 = arith.constant 80 : i32
      %120 = vector.broadcast %c80_i32_56 : i32 to vector<1x128xi32>
      %121 = arith.cmpi sge, %24, %120 : vector<1x128xi32>
      %c96_i32 = arith.constant 96 : i32
      %122 = vector.broadcast %c96_i32 : i32 to vector<1x128xi32>
      %123 = arith.cmpi slt, %24, %122 : vector<1x128xi32>
      %124 = arith.andi %121, %123 : vector<1x128xi1>
      %125 = arith.extui %124 : vector<1x128xi1> to vector<1x128xi32>
      %126 = arith.sitofp %125 : vector<1x128xi32> to vector<1x128xf32>
      %c5 = arith.constant 5 : index
      %c0_57 = arith.constant 0 : index
      %c0_58 = arith.constant 0 : index
      %127 = vector.load %arg3[%c5, %c0_57, %c0_58] : memref<8x8x8xf32, #tpu.memory_space<vmem>>, vector<1x8x8xf32>
      %128 = vector.shape_cast %127 : vector<1x8x8xf32> to vector<8x8xf32>
      %129 = vector.broadcast %126 : vector<1x128xf32> to vector<8x128xf32>
      %130 = arith.mulf %19, %129 : vector<8x128xf32>
      %cst_59 = arith.constant dense<0.000000e+00> : vector<8x128xf32>
      %131 = tpu.matmul %128, %130, %cst_59 {dimension_numbers = #tpu.dot_dimension_numbers<[1], [0], [0], [1], [0, 0, 1, 1], [], []>} : vector<8x8xf32>, vector<8x128xf32>, vector<8x128xf32> -> vector<8x128xf32>
      %132 = arith.addf %119, %131 : vector<8x128xf32>
      %c5_60 = arith.constant 5 : index
      %c0_61 = arith.constant 0 : index
      %c0_62 = arith.constant 0 : index
      %133 = vector.load %arg4[%c5_60, %c0_61, %c0_62] : memref<8x8x8xf32, #tpu.memory_space<vmem>>, vector<1x8x8xf32>
      %134 = vector.shape_cast %133 : vector<1x8x8xf32> to vector<8x8xf32>
      %135 = vector.broadcast %126 : vector<1x128xf32> to vector<8x128xf32>
      %136 = arith.mulf %22, %135 : vector<8x128xf32>
      %cst_63 = arith.constant dense<0.000000e+00> : vector<8x128xf32>
      %137 = tpu.matmul %134, %136, %cst_63 {dimension_numbers = #tpu.dot_dimension_numbers<[1], [0], [0], [1], [0, 0, 1, 1], [], []>} : vector<8x8xf32>, vector<8x128xf32>, vector<8x128xf32> -> vector<8x128xf32>
      %138 = arith.addf %132, %137 : vector<8x128xf32>
      %c96_i32_64 = arith.constant 96 : i32
      %139 = vector.broadcast %c96_i32_64 : i32 to vector<1x128xi32>
      %140 = arith.cmpi sge, %24, %139 : vector<1x128xi32>
      %c112_i32 = arith.constant 112 : i32
      %141 = vector.broadcast %c112_i32 : i32 to vector<1x128xi32>
      %142 = arith.cmpi slt, %24, %141 : vector<1x128xi32>
      %143 = arith.andi %140, %142 : vector<1x128xi1>
      %144 = arith.extui %143 : vector<1x128xi1> to vector<1x128xi32>
      %145 = arith.sitofp %144 : vector<1x128xi32> to vector<1x128xf32>
      %c6 = arith.constant 6 : index
      %c0_65 = arith.constant 0 : index
      %c0_66 = arith.constant 0 : index
      %146 = vector.load %arg3[%c6, %c0_65, %c0_66] : memref<8x8x8xf32, #tpu.memory_space<vmem>>, vector<1x8x8xf32>
      %147 = vector.shape_cast %146 : vector<1x8x8xf32> to vector<8x8xf32>
      %148 = vector.broadcast %145 : vector<1x128xf32> to vector<8x128xf32>
      %149 = arith.mulf %19, %148 : vector<8x128xf32>
      %cst_67 = arith.constant dense<0.000000e+00> : vector<8x128xf32>
      %150 = tpu.matmul %147, %149, %cst_67 {dimension_numbers = #tpu.dot_dimension_numbers<[1], [0], [0], [1], [0, 0, 1, 1], [], []>} : vector<8x8xf32>, vector<8x128xf32>, vector<8x128xf32> -> vector<8x128xf32>
      %151 = arith.addf %138, %150 : vector<8x128xf32>
      %c6_68 = arith.constant 6 : index
      %c0_69 = arith.constant 0 : index
      %c0_70 = arith.constant 0 : index
      %152 = vector.load %arg4[%c6_68, %c0_69, %c0_70] : memref<8x8x8xf32, #tpu.memory_space<vmem>>, vector<1x8x8xf32>
      %153 = vector.shape_cast %152 : vector<1x8x8xf32> to vector<8x8xf32>
      %154 = vector.broadcast %145 : vector<1x128xf32> to vector<8x128xf32>
      %155 = arith.mulf %22, %154 : vector<8x128xf32>
      %cst_71 = arith.constant dense<0.000000e+00> : vector<8x128xf32>
      %156 = tpu.matmul %153, %155, %cst_71 {dimension_numbers = #tpu.dot_dimension_numbers<[1], [0], [0], [1], [0, 0, 1, 1], [], []>} : vector<8x8xf32>, vector<8x128xf32>, vector<8x128xf32> -> vector<8x128xf32>
      %157 = arith.addf %151, %156 : vector<8x128xf32>
      %c112_i32_72 = arith.constant 112 : i32
      %158 = vector.broadcast %c112_i32_72 : i32 to vector<1x128xi32>
      %159 = arith.cmpi sge, %24, %158 : vector<1x128xi32>
      %c128_i32 = arith.constant 128 : i32
      %160 = vector.broadcast %c128_i32 : i32 to vector<1x128xi32>
      %161 = arith.cmpi slt, %24, %160 : vector<1x128xi32>
      %162 = arith.andi %159, %161 : vector<1x128xi1>
      %163 = arith.extui %162 : vector<1x128xi1> to vector<1x128xi32>
      %164 = arith.sitofp %163 : vector<1x128xi32> to vector<1x128xf32>
      %c7 = arith.constant 7 : index
      %c0_73 = arith.constant 0 : index
      %c0_74 = arith.constant 0 : index
      %165 = vector.load %arg3[%c7, %c0_73, %c0_74] : memref<8x8x8xf32, #tpu.memory_space<vmem>>, vector<1x8x8xf32>
      %166 = vector.shape_cast %165 : vector<1x8x8xf32> to vector<8x8xf32>
      %167 = vector.broadcast %164 : vector<1x128xf32> to vector<8x128xf32>
      %168 = arith.mulf %19, %167 : vector<8x128xf32>
      %cst_75 = arith.constant dense<0.000000e+00> : vector<8x128xf32>
      %169 = tpu.matmul %166, %168, %cst_75 {dimension_numbers = #tpu.dot_dimension_numbers<[1], [0], [0], [1], [0, 0, 1, 1], [], []>} : vector<8x8xf32>, vector<8x128xf32>, vector<8x128xf32> -> vector<8x128xf32>
      %170 = arith.addf %157, %169 : vector<8x128xf32>
      %c7_76 = arith.constant 7 : index
      %c0_77 = arith.constant 0 : index
      %c0_78 = arith.constant 0 : index
      %171 = vector.load %arg4[%c7_76, %c0_77, %c0_78] : memref<8x8x8xf32, #tpu.memory_space<vmem>>, vector<1x8x8xf32>
      %172 = vector.shape_cast %171 : vector<1x8x8xf32> to vector<8x8xf32>
      %173 = vector.broadcast %164 : vector<1x128xf32> to vector<8x128xf32>
      %174 = arith.mulf %22, %173 : vector<8x128xf32>
      %cst_79 = arith.constant dense<0.000000e+00> : vector<8x128xf32>
      %175 = tpu.matmul %172, %174, %cst_79 {dimension_numbers = #tpu.dot_dimension_numbers<[1], [0], [0], [1], [0, 0, 1, 1], [], []>} : vector<8x8xf32>, vector<8x128xf32>, vector<8x128xf32> -> vector<8x128xf32>
      %176 = arith.addf %170, %175 : vector<8x128xf32>
      %177 = math.absf %176 : vector<8x128xf32>
      %cst_80 = arith.constant dense<0xFF800000> : vector<128xf32>
      %178 = vector.multi_reduction <maximumf>, %177, %cst_80 [0] : vector<8x128xf32> to vector<128xf32>
      %179 = vector.shape_cast %178 : vector<128xf32> to vector<1x128xf32>
      %180 = tpu.iota {dimensions = array<i32: 1>} : vector<1x128xi32>
      %cst_81 = arith.constant 0.000000e+00 : f32
      %181 = vector.broadcast %cst_81 : f32 to vector<1x128xf32>
      %c0_i32_82 = arith.constant 0 : i32
      %182 = vector.broadcast %c0_i32_82 : i32 to vector<1x128xi32>
      %183 = arith.cmpi sge, %180, %182 : vector<1x128xi32>
      %c16_i32_83 = arith.constant 16 : i32
      %184 = vector.broadcast %c16_i32_83 : i32 to vector<1x128xi32>
      %185 = arith.cmpi slt, %180, %184 : vector<1x128xi32>
      %186 = arith.andi %183, %185 : vector<1x128xi1>
      %187 = arith.extui %186 : vector<1x128xi1> to vector<1x128xi32>
      %188 = arith.sitofp %187 : vector<1x128xi32> to vector<1x128xf32>
      %189 = arith.mulf %179, %188 : vector<1x128xf32>
      %190 = vector.shape_cast %189 : vector<1x128xf32> to vector<1x1x128xf32>
      %cst_84 = arith.constant dense<0xFF800000> : vector<1xf32>
      %191 = vector.multi_reduction <maximumf>, %190, %cst_84 [1, 2] : vector<1x1x128xf32> to vector<1xf32>
      %192 = vector.shape_cast %191 : vector<1xf32> to vector<1x1x1xf32>
      %193 = vector.extract %192[0, 0, 0] : f32 from vector<1x1x1xf32>
      %cst_85 = arith.constant 1.000000e-30 : f32
      %194 = arith.maximumf %193, %cst_85 : f32
      %cst_86 = arith.constant 1.000000e-01 : f32
      %195 = arith.mulf %cst_86, %194 : f32
      %cst_87 = arith.constant 1.000000e+00 : f32
      %196 = arith.divf %cst_87, %195 : f32
      %197 = vector.broadcast %196 : f32 to vector<1x128xf32>
      %198 = arith.mulf %188, %197 : vector<1x128xf32>
      %199 = arith.addf %181, %198 : vector<1x128xf32>
      %c16_i32_88 = arith.constant 16 : i32
      %200 = vector.broadcast %c16_i32_88 : i32 to vector<1x128xi32>
      %201 = arith.cmpi sge, %180, %200 : vector<1x128xi32>
      %c32_i32_89 = arith.constant 32 : i32
      %202 = vector.broadcast %c32_i32_89 : i32 to vector<1x128xi32>
      %203 = arith.cmpi slt, %180, %202 : vector<1x128xi32>
      %204 = arith.andi %201, %203 : vector<1x128xi1>
      %205 = arith.extui %204 : vector<1x128xi1> to vector<1x128xi32>
      %206 = arith.sitofp %205 : vector<1x128xi32> to vector<1x128xf32>
      %207 = arith.mulf %179, %206 : vector<1x128xf32>
      %208 = vector.shape_cast %207 : vector<1x128xf32> to vector<1x1x128xf32>
      %cst_90 = arith.constant dense<0xFF800000> : vector<1xf32>
      %209 = vector.multi_reduction <maximumf>, %208, %cst_90 [1, 2] : vector<1x1x128xf32> to vector<1xf32>
      %210 = vector.shape_cast %209 : vector<1xf32> to vector<1x1x1xf32>
      %211 = vector.extract %210[0, 0, 0] : f32 from vector<1x1x1xf32>
      %cst_91 = arith.constant 1.000000e-30 : f32
      %212 = arith.maximumf %211, %cst_91 : f32
      %cst_92 = arith.constant 1.000000e-01 : f32
      %213 = arith.mulf %cst_92, %212 : f32
      %cst_93 = arith.constant 1.000000e+00 : f32
      %214 = arith.divf %cst_93, %213 : f32
      %215 = vector.broadcast %214 : f32 to vector<1x128xf32>
      %216 = arith.mulf %206, %215 : vector<1x128xf32>
      %217 = arith.addf %199, %216 : vector<1x128xf32>
      %c32_i32_94 = arith.constant 32 : i32
      %218 = vector.broadcast %c32_i32_94 : i32 to vector<1x128xi32>
      %219 = arith.cmpi sge, %180, %218 : vector<1x128xi32>
      %c48_i32_95 = arith.constant 48 : i32
      %220 = vector.broadcast %c48_i32_95 : i32 to vector<1x128xi32>
      %221 = arith.cmpi slt, %180, %220 : vector<1x128xi32>
      %222 = arith.andi %219, %221 : vector<1x128xi1>
      %223 = arith.extui %222 : vector<1x128xi1> to vector<1x128xi32>
      %224 = arith.sitofp %223 : vector<1x128xi32> to vector<1x128xf32>
      %225 = arith.mulf %179, %224 : vector<1x128xf32>
      %226 = vector.shape_cast %225 : vector<1x128xf32> to vector<1x1x128xf32>
      %cst_96 = arith.constant dense<0xFF800000> : vector<1xf32>
      %227 = vector.multi_reduction <maximumf>, %226, %cst_96 [1, 2] : vector<1x1x128xf32> to vector<1xf32>
      %228 = vector.shape_cast %227 : vector<1xf32> to vector<1x1x1xf32>
      %229 = vector.extract %228[0, 0, 0] : f32 from vector<1x1x1xf32>
      %cst_97 = arith.constant 1.000000e-30 : f32
      %230 = arith.maximumf %229, %cst_97 : f32
      %cst_98 = arith.constant 1.000000e-01 : f32
      %231 = arith.mulf %cst_98, %230 : f32
      %cst_99 = arith.constant 1.000000e+00 : f32
      %232 = arith.divf %cst_99, %231 : f32
      %233 = vector.broadcast %232 : f32 to vector<1x128xf32>
      %234 = arith.mulf %224, %233 : vector<1x128xf32>
      %235 = arith.addf %217, %234 : vector<1x128xf32>
      %c48_i32_100 = arith.constant 48 : i32
      %236 = vector.broadcast %c48_i32_100 : i32 to vector<1x128xi32>
      %237 = arith.cmpi sge, %180, %236 : vector<1x128xi32>
      %c64_i32_101 = arith.constant 64 : i32
      %238 = vector.broadcast %c64_i32_101 : i32 to vector<1x128xi32>
      %239 = arith.cmpi slt, %180, %238 : vector<1x128xi32>
      %240 = arith.andi %237, %239 : vector<1x128xi1>
      %241 = arith.extui %240 : vector<1x128xi1> to vector<1x128xi32>
      %242 = arith.sitofp %241 : vector<1x128xi32> to vector<1x128xf32>
      %243 = arith.mulf %179, %242 : vector<1x128xf32>
      %244 = vector.shape_cast %243 : vector<1x128xf32> to vector<1x1x128xf32>
      %cst_102 = arith.constant dense<0xFF800000> : vector<1xf32>
      %245 = vector.multi_reduction <maximumf>, %244, %cst_102 [1, 2] : vector<1x1x128xf32> to vector<1xf32>
      %246 = vector.shape_cast %245 : vector<1xf32> to vector<1x1x1xf32>
      %247 = vector.extract %246[0, 0, 0] : f32 from vector<1x1x1xf32>
      %cst_103 = arith.constant 1.000000e-30 : f32
      %248 = arith.maximumf %247, %cst_103 : f32
      %cst_104 = arith.constant 1.000000e-01 : f32
      %249 = arith.mulf %cst_104, %248 : f32
      %cst_105 = arith.constant 1.000000e+00 : f32
      %250 = arith.divf %cst_105, %249 : f32
      %251 = vector.broadcast %250 : f32 to vector<1x128xf32>
      %252 = arith.mulf %242, %251 : vector<1x128xf32>
      %253 = arith.addf %235, %252 : vector<1x128xf32>
      %c64_i32_106 = arith.constant 64 : i32
      %254 = vector.broadcast %c64_i32_106 : i32 to vector<1x128xi32>
      %255 = arith.cmpi sge, %180, %254 : vector<1x128xi32>
      %c80_i32_107 = arith.constant 80 : i32
      %256 = vector.broadcast %c80_i32_107 : i32 to vector<1x128xi32>
      %257 = arith.cmpi slt, %180, %256 : vector<1x128xi32>
      %258 = arith.andi %255, %257 : vector<1x128xi1>
      %259 = arith.extui %258 : vector<1x128xi1> to vector<1x128xi32>
      %260 = arith.sitofp %259 : vector<1x128xi32> to vector<1x128xf32>
      %261 = arith.mulf %179, %260 : vector<1x128xf32>
      %262 = vector.shape_cast %261 : vector<1x128xf32> to vector<1x1x128xf32>
      %cst_108 = arith.constant dense<0xFF800000> : vector<1xf32>
      %263 = vector.multi_reduction <maximumf>, %262, %cst_108 [1, 2] : vector<1x1x128xf32> to vector<1xf32>
      %264 = vector.shape_cast %263 : vector<1xf32> to vector<1x1x1xf32>
      %265 = vector.extract %264[0, 0, 0] : f32 from vector<1x1x1xf32>
      %cst_109 = arith.constant 1.000000e-30 : f32
      %266 = arith.maximumf %265, %cst_109 : f32
      %cst_110 = arith.constant 1.000000e-01 : f32
      %267 = arith.mulf %cst_110, %266 : f32
      %cst_111 = arith.constant 1.000000e+00 : f32
      %268 = arith.divf %cst_111, %267 : f32
      %269 = vector.broadcast %268 : f32 to vector<1x128xf32>
      %270 = arith.mulf %260, %269 : vector<1x128xf32>
      %271 = arith.addf %253, %270 : vector<1x128xf32>
      %c80_i32_112 = arith.constant 80 : i32
      %272 = vector.broadcast %c80_i32_112 : i32 to vector<1x128xi32>
      %273 = arith.cmpi sge, %180, %272 : vector<1x128xi32>
      %c96_i32_113 = arith.constant 96 : i32
      %274 = vector.broadcast %c96_i32_113 : i32 to vector<1x128xi32>
      %275 = arith.cmpi slt, %180, %274 : vector<1x128xi32>
      %276 = arith.andi %273, %275 : vector<1x128xi1>
      %277 = arith.extui %276 : vector<1x128xi1> to vector<1x128xi32>
      %278 = arith.sitofp %277 : vector<1x128xi32> to vector<1x128xf32>
      %279 = arith.mulf %179, %278 : vector<1x128xf32>
      %280 = vector.shape_cast %279 : vector<1x128xf32> to vector<1x1x128xf32>
      %cst_114 = arith.constant dense<0xFF800000> : vector<1xf32>
      %281 = vector.multi_reduction <maximumf>, %280, %cst_114 [1, 2] : vector<1x1x128xf32> to vector<1xf32>
      %282 = vector.shape_cast %281 : vector<1xf32> to vector<1x1x1xf32>
      %283 = vector.extract %282[0, 0, 0] : f32 from vector<1x1x1xf32>
      %cst_115 = arith.constant 1.000000e-30 : f32
      %284 = arith.maximumf %283, %cst_115 : f32
      %cst_116 = arith.constant 1.000000e-01 : f32
      %285 = arith.mulf %cst_116, %284 : f32
      %cst_117 = arith.constant 1.000000e+00 : f32
      %286 = arith.divf %cst_117, %285 : f32
      %287 = vector.broadcast %286 : f32 to vector<1x128xf32>
      %288 = arith.mulf %278, %287 : vector<1x128xf32>
      %289 = arith.addf %271, %288 : vector<1x128xf32>
      %c96_i32_118 = arith.constant 96 : i32
      %290 = vector.broadcast %c96_i32_118 : i32 to vector<1x128xi32>
      %291 = arith.cmpi sge, %180, %290 : vector<1x128xi32>
      %c112_i32_119 = arith.constant 112 : i32
      %292 = vector.broadcast %c112_i32_119 : i32 to vector<1x128xi32>
      %293 = arith.cmpi slt, %180, %292 : vector<1x128xi32>
      %294 = arith.andi %291, %293 : vector<1x128xi1>
      %295 = arith.extui %294 : vector<1x128xi1> to vector<1x128xi32>
      %296 = arith.sitofp %295 : vector<1x128xi32> to vector<1x128xf32>
      %297 = arith.mulf %179, %296 : vector<1x128xf32>
      %298 = vector.shape_cast %297 : vector<1x128xf32> to vector<1x1x128xf32>
      %cst_120 = arith.constant dense<0xFF800000> : vector<1xf32>
      %299 = vector.multi_reduction <maximumf>, %298, %cst_120 [1, 2] : vector<1x1x128xf32> to vector<1xf32>
      %300 = vector.shape_cast %299 : vector<1xf32> to vector<1x1x1xf32>
      %301 = vector.extract %300[0, 0, 0] : f32 from vector<1x1x1xf32>
      %cst_121 = arith.constant 1.000000e-30 : f32
      %302 = arith.maximumf %301, %cst_121 : f32
      %cst_122 = arith.constant 1.000000e-01 : f32
      %303 = arith.mulf %cst_122, %302 : f32
      %cst_123 = arith.constant 1.000000e+00 : f32
      %304 = arith.divf %cst_123, %303 : f32
      %305 = vector.broadcast %304 : f32 to vector<1x128xf32>
      %306 = arith.mulf %296, %305 : vector<1x128xf32>
      %307 = arith.addf %289, %306 : vector<1x128xf32>
      %c112_i32_124 = arith.constant 112 : i32
      %308 = vector.broadcast %c112_i32_124 : i32 to vector<1x128xi32>
      %309 = arith.cmpi sge, %180, %308 : vector<1x128xi32>
      %c128_i32_125 = arith.constant 128 : i32
      %310 = vector.broadcast %c128_i32_125 : i32 to vector<1x128xi32>
      %311 = arith.cmpi slt, %180, %310 : vector<1x128xi32>
      %312 = arith.andi %309, %311 : vector<1x128xi1>
      %313 = arith.extui %312 : vector<1x128xi1> to vector<1x128xi32>
      %314 = arith.sitofp %313 : vector<1x128xi32> to vector<1x128xf32>
      %315 = arith.mulf %179, %314 : vector<1x128xf32>
      %316 = vector.shape_cast %315 : vector<1x128xf32> to vector<1x1x128xf32>
      %cst_126 = arith.constant dense<0xFF800000> : vector<1xf32>
      %317 = vector.multi_reduction <maximumf>, %316, %cst_126 [1, 2] : vector<1x1x128xf32> to vector<1xf32>
      %318 = vector.shape_cast %317 : vector<1xf32> to vector<1x1x1xf32>
      %319 = vector.extract %318[0, 0, 0] : f32 from vector<1x1x1xf32>
      %cst_127 = arith.constant 1.000000e-30 : f32
      %320 = arith.maximumf %319, %cst_127 : f32
      %cst_128 = arith.constant 1.000000e-01 : f32
      %321 = arith.mulf %cst_128, %320 : f32
      %cst_129 = arith.constant 1.000000e+00 : f32
      %322 = arith.divf %cst_129, %321 : f32
      %323 = vector.broadcast %322 : f32 to vector<1x128xf32>
      %324 = arith.mulf %314, %323 : vector<1x128xf32>
      %325 = arith.addf %307, %324 : vector<1x128xf32>
      %326 = vector.broadcast %325 : vector<1x128xf32> to vector<8x128xf32>
      %327 = arith.mulf %176, %326 : vector<8x128xf32>
      %328 = math.exp %327 : vector<8x128xf32>
      %cst_130 = arith.constant 1.000000e+00 : f32
      %329 = vector.broadcast %cst_130 : f32 to vector<8x128xf32>
      %cst_131 = arith.constant 1.000000e+00 : f32
      %330 = vector.broadcast %cst_131 : f32 to vector<1x128xf32>
      %c0_i32_132 = arith.constant 0 : i32
      %331 = vector.broadcast %330 : vector<1x128xf32> to vector<8x128xf32>
      %332 = arith.mulf %328, %331 : vector<8x128xf32>
      "tpu.trace_start"() <{level = 10 : i32, message = "il,jl->ij"}> : () -> ()
      %cst_133 = arith.constant dense<0.000000e+00> : vector<8x8xf32>
      %333 = tpu.matmul %332, %12, %cst_133 {dimension_numbers = #tpu.dot_dimension_numbers<[1], [1], [0], [0], [0, 0, 1, 0], [], []>} : vector<8x128xf32>, vector<8x128xf32>, vector<8x8xf32> -> vector<8x8xf32>
      "tpu.trace_stop"() : () -> ()
      %cst_134 = arith.constant dense<0.000000e+00> : vector<8x128xf32>
      %334 = tpu.matmul %333, %12, %cst_134 {dimension_numbers = #tpu.dot_dimension_numbers<[1], [0], [0], [1], [0, 0, 1, 1], [], []>} : vector<8x8xf32>, vector<8x128xf32>, vector<8x128xf32> -> vector<8x128xf32>
      %335 = tpu.reciprocal %334 {approx = true} : vector<8x128xf32> -> vector<8x128xf32>
      %336 = arith.mulf %334, %335 : vector<8x128xf32>
      %cst_135 = arith.constant 2.000000e+00 : f32
      %337 = vector.broadcast %cst_135 : f32 to vector<8x128xf32>
      %338 = arith.subf %337, %336 : vector<8x128xf32>
      %339 = arith.mulf %335, %338 : vector<8x128xf32>
      %340 = arith.mulf %328, %339 : vector<8x128xf32>
      %cst_136 = arith.constant dense<0.000000e+00> : vector<128xf32>
      %341 = vector.multi_reduction <add>, %340, %cst_136 [0] : vector<8x128xf32> to vector<128xf32>
      %342 = vector.shape_cast %341 : vector<128xf32> to vector<1x128xf32>
      %343 = tpu.reciprocal %342 {approx = true} : vector<1x128xf32> -> vector<1x128xf32>
      %344 = arith.mulf %342, %343 : vector<1x128xf32>
      %cst_137 = arith.constant 2.000000e+00 : f32
      %345 = vector.broadcast %cst_137 : f32 to vector<1x128xf32>
      %346 = arith.subf %345, %344 : vector<1x128xf32>
      %347 = arith.mulf %343, %346 : vector<1x128xf32>
      %cst_138 = arith.constant 1.000000e+00 : f32
      %348 = vector.broadcast %cst_138 : f32 to vector<1x128xf32>
      %349 = arith.minimumf %347, %348 : vector<1x128xf32>
      %c1_i32_139 = arith.constant 1 : i32
      %350 = vector.broadcast %349 : vector<1x128xf32> to vector<8x128xf32>
      %351 = arith.mulf %328, %350 : vector<8x128xf32>
      "tpu.trace_start"() <{level = 10 : i32, message = "il,jl->ij"}> : () -> ()
      %cst_140 = arith.constant dense<0.000000e+00> : vector<8x8xf32>
      %352 = tpu.matmul %351, %12, %cst_140 {dimension_numbers = #tpu.dot_dimension_numbers<[1], [1], [0], [0], [0, 0, 1, 0], [], []>} : vector<8x128xf32>, vector<8x128xf32>, vector<8x8xf32> -> vector<8x8xf32>
      "tpu.trace_stop"() : () -> ()
      %cst_141 = arith.constant dense<0.000000e+00> : vector<8x128xf32>
      %353 = tpu.matmul %352, %12, %cst_141 {dimension_numbers = #tpu.dot_dimension_numbers<[1], [0], [0], [1], [0, 0, 1, 1], [], []>} : vector<8x8xf32>, vector<8x128xf32>, vector<8x128xf32> -> vector<8x128xf32>
      %354 = tpu.reciprocal %353 {approx = true} : vector<8x128xf32> -> vector<8x128xf32>
      %355 = arith.mulf %353, %354 : vector<8x128xf32>
      %cst_142 = arith.constant 2.000000e+00 : f32
      %356 = vector.broadcast %cst_142 : f32 to vector<8x128xf32>
      %357 = arith.subf %356, %355 : vector<8x128xf32>
      %358 = arith.mulf %354, %357 : vector<8x128xf32>
      %359 = arith.mulf %328, %358 : vector<8x128xf32>
      %cst_143 = arith.constant dense<0.000000e+00> : vector<128xf32>
      %360 = vector.multi_reduction <add>, %359, %cst_143 [0] : vector<8x128xf32> to vector<128xf32>
      %361 = vector.shape_cast %360 : vector<128xf32> to vector<1x128xf32>
      %362 = tpu.reciprocal %361 {approx = true} : vector<1x128xf32> -> vector<1x128xf32>
      %363 = arith.mulf %361, %362 : vector<1x128xf32>
      %cst_144 = arith.constant 2.000000e+00 : f32
      %364 = vector.broadcast %cst_144 : f32 to vector<1x128xf32>
      %365 = arith.subf %364, %363 : vector<1x128xf32>
      %366 = arith.mulf %362, %365 : vector<1x128xf32>
      %cst_145 = arith.constant 1.000000e+00 : f32
      %367 = vector.broadcast %cst_145 : f32 to vector<1x128xf32>
      %368 = arith.minimumf %366, %367 : vector<1x128xf32>
      %c2_i32 = arith.constant 2 : i32
      %369 = vector.broadcast %368 : vector<1x128xf32> to vector<8x128xf32>
      %370 = arith.mulf %328, %369 : vector<8x128xf32>
      "tpu.trace_start"() <{level = 10 : i32, message = "il,jl->ij"}> : () -> ()
      %cst_146 = arith.constant dense<0.000000e+00> : vector<8x8xf32>
      %371 = tpu.matmul %370, %12, %cst_146 {dimension_numbers = #tpu.dot_dimension_numbers<[1], [1], [0], [0], [0, 0, 1, 0], [], []>} : vector<8x128xf32>, vector<8x128xf32>, vector<8x8xf32> -> vector<8x8xf32>
      "tpu.trace_stop"() : () -> ()
      %cst_147 = arith.constant dense<0.000000e+00> : vector<8x128xf32>
      %372 = tpu.matmul %371, %12, %cst_147 {dimension_numbers = #tpu.dot_dimension_numbers<[1], [0], [0], [1], [0, 0, 1, 1], [], []>} : vector<8x8xf32>, vector<8x128xf32>, vector<8x128xf32> -> vector<8x128xf32>
      %373 = tpu.reciprocal %372 {approx = true} : vector<8x128xf32> -> vector<8x128xf32>
      %374 = arith.mulf %372, %373 : vector<8x128xf32>
      %cst_148 = arith.constant 2.000000e+00 : f32
      %375 = vector.broadcast %cst_148 : f32 to vector<8x128xf32>
      %376 = arith.subf %375, %374 : vector<8x128xf32>
      %377 = arith.mulf %373, %376 : vector<8x128xf32>
      %378 = arith.mulf %328, %377 : vector<8x128xf32>
      %cst_149 = arith.constant dense<0.000000e+00> : vector<128xf32>
      %379 = vector.multi_reduction <add>, %378, %cst_149 [0] : vector<8x128xf32> to vector<128xf32>
      %380 = vector.shape_cast %379 : vector<128xf32> to vector<1x128xf32>
      %381 = tpu.reciprocal %380 {approx = true} : vector<1x128xf32> -> vector<1x128xf32>
      %382 = arith.mulf %380, %381 : vector<1x128xf32>
      %cst_150 = arith.constant 2.000000e+00 : f32
      %383 = vector.broadcast %cst_150 : f32 to vector<1x128xf32>
      %384 = arith.subf %383, %382 : vector<1x128xf32>
      %385 = arith.mulf %381, %384 : vector<1x128xf32>
      %cst_151 = arith.constant 1.000000e+00 : f32
      %386 = vector.broadcast %cst_151 : f32 to vector<1x128xf32>
      %387 = arith.minimumf %385, %386 : vector<1x128xf32>
      %c3_i32 = arith.constant 3 : i32
      %388 = vector.broadcast %387 : vector<1x128xf32> to vector<8x128xf32>
      %389 = arith.mulf %328, %388 : vector<8x128xf32>
      "tpu.trace_start"() <{level = 10 : i32, message = "il,jl->ij"}> : () -> ()
      %cst_152 = arith.constant dense<0.000000e+00> : vector<8x8xf32>
      %390 = tpu.matmul %389, %12, %cst_152 {dimension_numbers = #tpu.dot_dimension_numbers<[1], [1], [0], [0], [0, 0, 1, 0], [], []>} : vector<8x128xf32>, vector<8x128xf32>, vector<8x8xf32> -> vector<8x8xf32>
      "tpu.trace_stop"() : () -> ()
      %cst_153 = arith.constant dense<0.000000e+00> : vector<8x128xf32>
      %391 = tpu.matmul %390, %12, %cst_153 {dimension_numbers = #tpu.dot_dimension_numbers<[1], [0], [0], [1], [0, 0, 1, 1], [], []>} : vector<8x8xf32>, vector<8x128xf32>, vector<8x128xf32> -> vector<8x128xf32>
      %392 = tpu.reciprocal %391 {approx = true} : vector<8x128xf32> -> vector<8x128xf32>
      %393 = arith.mulf %391, %392 : vector<8x128xf32>
      %cst_154 = arith.constant 2.000000e+00 : f32
      %394 = vector.broadcast %cst_154 : f32 to vector<8x128xf32>
      %395 = arith.subf %394, %393 : vector<8x128xf32>
      %396 = arith.mulf %392, %395 : vector<8x128xf32>
      %397 = arith.mulf %328, %396 : vector<8x128xf32>
      %cst_155 = arith.constant dense<0.000000e+00> : vector<128xf32>
      %398 = vector.multi_reduction <add>, %397, %cst_155 [0] : vector<8x128xf32> to vector<128xf32>
      %399 = vector.shape_cast %398 : vector<128xf32> to vector<1x128xf32>
      %400 = tpu.reciprocal %399 {approx = true} : vector<1x128xf32> -> vector<1x128xf32>
      %401 = arith.mulf %399, %400 : vector<1x128xf32>
      %cst_156 = arith.constant 2.000000e+00 : f32
      %402 = vector.broadcast %cst_156 : f32 to vector<1x128xf32>
      %403 = arith.subf %402, %401 : vector<1x128xf32>
      %404 = arith.mulf %400, %403 : vector<1x128xf32>
      %cst_157 = arith.constant 1.000000e+00 : f32
      %405 = vector.broadcast %cst_157 : f32 to vector<1x128xf32>
      %406 = arith.minimumf %404, %405 : vector<1x128xf32>
      %c4_i32 = arith.constant 4 : i32
      %407 = vector.broadcast %406 : vector<1x128xf32> to vector<8x128xf32>
      %408 = arith.mulf %328, %407 : vector<8x128xf32>
      "tpu.trace_start"() <{level = 10 : i32, message = "il,jl->ij"}> : () -> ()
      %cst_158 = arith.constant dense<0.000000e+00> : vector<8x8xf32>
      %409 = tpu.matmul %408, %12, %cst_158 {dimension_numbers = #tpu.dot_dimension_numbers<[1], [1], [0], [0], [0, 0, 1, 0], [], []>} : vector<8x128xf32>, vector<8x128xf32>, vector<8x8xf32> -> vector<8x8xf32>
      "tpu.trace_stop"() : () -> ()
      %cst_159 = arith.constant dense<0.000000e+00> : vector<8x128xf32>
      %410 = tpu.matmul %409, %12, %cst_159 {dimension_numbers = #tpu.dot_dimension_numbers<[1], [0], [0], [1], [0, 0, 1, 1], [], []>} : vector<8x8xf32>, vector<8x128xf32>, vector<8x128xf32> -> vector<8x128xf32>
      %411 = tpu.reciprocal %410 {approx = true} : vector<8x128xf32> -> vector<8x128xf32>
      %412 = arith.mulf %410, %411 : vector<8x128xf32>
      %cst_160 = arith.constant 2.000000e+00 : f32
      %413 = vector.broadcast %cst_160 : f32 to vector<8x128xf32>
      %414 = arith.subf %413, %412 : vector<8x128xf32>
      %415 = arith.mulf %411, %414 : vector<8x128xf32>
      %416 = arith.mulf %328, %415 : vector<8x128xf32>
      %cst_161 = arith.constant dense<0.000000e+00> : vector<128xf32>
      %417 = vector.multi_reduction <add>, %416, %cst_161 [0] : vector<8x128xf32> to vector<128xf32>
      %418 = vector.shape_cast %417 : vector<128xf32> to vector<1x128xf32>
      %419 = tpu.reciprocal %418 {approx = true} : vector<1x128xf32> -> vector<1x128xf32>
      %420 = arith.mulf %418, %419 : vector<1x128xf32>
      %cst_162 = arith.constant 2.000000e+00 : f32
      %421 = vector.broadcast %cst_162 : f32 to vector<1x128xf32>
      %422 = arith.subf %421, %420 : vector<1x128xf32>
      %423 = arith.mulf %419, %422 : vector<1x128xf32>
      %cst_163 = arith.constant 1.000000e+00 : f32
      %424 = vector.broadcast %cst_163 : f32 to vector<1x128xf32>
      %425 = arith.minimumf %423, %424 : vector<1x128xf32>
      %c5_i32 = arith.constant 5 : i32
      %426 = vector.broadcast %425 : vector<1x128xf32> to vector<8x128xf32>
      %427 = arith.mulf %328, %426 : vector<8x128xf32>
      "tpu.trace_start"() <{level = 10 : i32, message = "il,jl->ij"}> : () -> ()
      %cst_164 = arith.constant dense<0.000000e+00> : vector<8x8xf32>
      %428 = tpu.matmul %427, %12, %cst_164 {dimension_numbers = #tpu.dot_dimension_numbers<[1], [1], [0], [0], [0, 0, 1, 0], [], []>} : vector<8x128xf32>, vector<8x128xf32>, vector<8x8xf32> -> vector<8x8xf32>
      "tpu.trace_stop"() : () -> ()
      %cst_165 = arith.constant dense<0.000000e+00> : vector<8x128xf32>
      %429 = tpu.matmul %428, %12, %cst_165 {dimension_numbers = #tpu.dot_dimension_numbers<[1], [0], [0], [1], [0, 0, 1, 1], [], []>} : vector<8x8xf32>, vector<8x128xf32>, vector<8x128xf32> -> vector<8x128xf32>
      %430 = tpu.reciprocal %429 {approx = true} : vector<8x128xf32> -> vector<8x128xf32>
      %431 = arith.mulf %429, %430 : vector<8x128xf32>
      %cst_166 = arith.constant 2.000000e+00 : f32
      %432 = vector.broadcast %cst_166 : f32 to vector<8x128xf32>
      %433 = arith.subf %432, %431 : vector<8x128xf32>
      %434 = arith.mulf %430, %433 : vector<8x128xf32>
      %435 = arith.mulf %328, %434 : vector<8x128xf32>
      %cst_167 = arith.constant dense<0.000000e+00> : vector<128xf32>
      %436 = vector.multi_reduction <add>, %435, %cst_167 [0] : vector<8x128xf32> to vector<128xf32>
      %437 = vector.shape_cast %436 : vector<128xf32> to vector<1x128xf32>
      %438 = tpu.reciprocal %437 {approx = true} : vector<1x128xf32> -> vector<1x128xf32>
      %439 = arith.mulf %437, %438 : vector<1x128xf32>
      %cst_168 = arith.constant 2.000000e+00 : f32
      %440 = vector.broadcast %cst_168 : f32 to vector<1x128xf32>
      %441 = arith.subf %440, %439 : vector<1x128xf32>
      %442 = arith.mulf %438, %441 : vector<1x128xf32>
      %cst_169 = arith.constant 1.000000e+00 : f32
      %443 = vector.broadcast %cst_169 : f32 to vector<1x128xf32>
      %444 = arith.minimumf %442, %443 : vector<1x128xf32>
      %c6_i32 = arith.constant 6 : i32
      %445 = vector.broadcast %444 : vector<1x128xf32> to vector<8x128xf32>
      %446 = arith.mulf %328, %445 : vector<8x128xf32>
      "tpu.trace_start"() <{level = 10 : i32, message = "il,jl->ij"}> : () -> ()
      %cst_170 = arith.constant dense<0.000000e+00> : vector<8x8xf32>
      %447 = tpu.matmul %446, %12, %cst_170 {dimension_numbers = #tpu.dot_dimension_numbers<[1], [1], [0], [0], [0, 0, 1, 0], [], []>} : vector<8x128xf32>, vector<8x128xf32>, vector<8x8xf32> -> vector<8x8xf32>
      "tpu.trace_stop"() : () -> ()
      %cst_171 = arith.constant dense<0.000000e+00> : vector<8x128xf32>
      %448 = tpu.matmul %447, %12, %cst_171 {dimension_numbers = #tpu.dot_dimension_numbers<[1], [0], [0], [1], [0, 0, 1, 1], [], []>} : vector<8x8xf32>, vector<8x128xf32>, vector<8x128xf32> -> vector<8x128xf32>
      %449 = tpu.reciprocal %448 {approx = true} : vector<8x128xf32> -> vector<8x128xf32>
      %450 = arith.mulf %448, %449 : vector<8x128xf32>
      %cst_172 = arith.constant 2.000000e+00 : f32
      %451 = vector.broadcast %cst_172 : f32 to vector<8x128xf32>
      %452 = arith.subf %451, %450 : vector<8x128xf32>
      %453 = arith.mulf %449, %452 : vector<8x128xf32>
      %454 = arith.mulf %328, %453 : vector<8x128xf32>
      %cst_173 = arith.constant dense<0.000000e+00> : vector<128xf32>
      %455 = vector.multi_reduction <add>, %454, %cst_173 [0] : vector<8x128xf32> to vector<128xf32>
      %456 = vector.shape_cast %455 : vector<128xf32> to vector<1x128xf32>
      %457 = tpu.reciprocal %456 {approx = true} : vector<1x128xf32> -> vector<1x128xf32>
      %458 = arith.mulf %456, %457 : vector<1x128xf32>
      %cst_174 = arith.constant 2.000000e+00 : f32
      %459 = vector.broadcast %cst_174 : f32 to vector<1x128xf32>
      %460 = arith.subf %459, %458 : vector<1x128xf32>
      %461 = arith.mulf %457, %460 : vector<1x128xf32>
      %cst_175 = arith.constant 1.000000e+00 : f32
      %462 = vector.broadcast %cst_175 : f32 to vector<1x128xf32>
      %463 = arith.minimumf %461, %462 : vector<1x128xf32>
      %c7_i32 = arith.constant 7 : i32
      %464 = vector.broadcast %463 : vector<1x128xf32> to vector<8x128xf32>
      %465 = arith.mulf %328, %464 : vector<8x128xf32>
      "tpu.trace_start"() <{level = 10 : i32, message = "il,jl->ij"}> : () -> ()
      %cst_176 = arith.constant dense<0.000000e+00> : vector<8x8xf32>
      %466 = tpu.matmul %465, %12, %cst_176 {dimension_numbers = #tpu.dot_dimension_numbers<[1], [1], [0], [0], [0, 0, 1, 0], [], []>} : vector<8x128xf32>, vector<8x128xf32>, vector<8x8xf32> -> vector<8x8xf32>
      "tpu.trace_stop"() : () -> ()
      %cst_177 = arith.constant dense<0.000000e+00> : vector<8x128xf32>
      %467 = tpu.matmul %466, %12, %cst_177 {dimension_numbers = #tpu.dot_dimension_numbers<[1], [0], [0], [1], [0, 0, 1, 1], [], []>} : vector<8x8xf32>, vector<8x128xf32>, vector<8x128xf32> -> vector<8x128xf32>
      %468 = tpu.reciprocal %467 {approx = true} : vector<8x128xf32> -> vector<8x128xf32>
      %469 = arith.mulf %467, %468 : vector<8x128xf32>
      %cst_178 = arith.constant 2.000000e+00 : f32
      %470 = vector.broadcast %cst_178 : f32 to vector<8x128xf32>
      %471 = arith.subf %470, %469 : vector<8x128xf32>
      %472 = arith.mulf %468, %471 : vector<8x128xf32>
      %473 = arith.mulf %328, %472 : vector<8x128xf32>
      %cst_179 = arith.constant dense<0.000000e+00> : vector<128xf32>
      %474 = vector.multi_reduction <add>, %473, %cst_179 [0] : vector<8x128xf32> to vector<128xf32>
      %475 = vector.shape_cast %474 : vector<128xf32> to vector<1x128xf32>
      %476 = tpu.reciprocal %475 {approx = true} : vector<1x128xf32> -> vector<1x128xf32>
      %477 = arith.mulf %475, %476 : vector<1x128xf32>
      %cst_180 = arith.constant 2.000000e+00 : f32
      %478 = vector.broadcast %cst_180 : f32 to vector<1x128xf32>
      %479 = arith.subf %478, %477 : vector<1x128xf32>
      %480 = arith.mulf %476, %479 : vector<1x128xf32>
      %cst_181 = arith.constant 1.000000e+00 : f32
      %481 = vector.broadcast %cst_181 : f32 to vector<1x128xf32>
      %482 = arith.minimumf %480, %481 : vector<1x128xf32>
      %c8_i32 = arith.constant 8 : i32
      %483 = vector.broadcast %482 : vector<1x128xf32> to vector<8x128xf32>
      %484 = arith.mulf %328, %483 : vector<8x128xf32>
      "tpu.trace_start"() <{level = 10 : i32, message = "il,jl->ij"}> : () -> ()
      %cst_182 = arith.constant dense<0.000000e+00> : vector<8x8xf32>
      %485 = tpu.matmul %484, %12, %cst_182 {dimension_numbers = #tpu.dot_dimension_numbers<[1], [1], [0], [0], [0, 0, 1, 0], [], []>} : vector<8x128xf32>, vector<8x128xf32>, vector<8x8xf32> -> vector<8x8xf32>
      "tpu.trace_stop"() : () -> ()
      %cst_183 = arith.constant dense<0.000000e+00> : vector<8x128xf32>
      %486 = tpu.matmul %485, %12, %cst_183 {dimension_numbers = #tpu.dot_dimension_numbers<[1], [0], [0], [1], [0, 0, 1, 1], [], []>} : vector<8x8xf32>, vector<8x128xf32>, vector<8x128xf32> -> vector<8x128xf32>
      %487 = tpu.reciprocal %486 {approx = true} : vector<8x128xf32> -> vector<8x128xf32>
      %488 = arith.mulf %486, %487 : vector<8x128xf32>
      %cst_184 = arith.constant 2.000000e+00 : f32
      %489 = vector.broadcast %cst_184 : f32 to vector<8x128xf32>
      %490 = arith.subf %489, %488 : vector<8x128xf32>
      %491 = arith.mulf %487, %490 : vector<8x128xf32>
      %492 = arith.mulf %328, %491 : vector<8x128xf32>
      %cst_185 = arith.constant dense<0.000000e+00> : vector<128xf32>
      %493 = vector.multi_reduction <add>, %492, %cst_185 [0] : vector<8x128xf32> to vector<128xf32>
      %494 = vector.shape_cast %493 : vector<128xf32> to vector<1x128xf32>
      %495 = tpu.reciprocal %494 {approx = true} : vector<1x128xf32> -> vector<1x128xf32>
      %496 = arith.mulf %494, %495 : vector<1x128xf32>
      %cst_186 = arith.constant 2.000000e+00 : f32
      %497 = vector.broadcast %cst_186 : f32 to vector<1x128xf32>
      %498 = arith.subf %497, %496 : vector<1x128xf32>
      %499 = arith.mulf %495, %498 : vector<1x128xf32>
      %cst_187 = arith.constant 1.000000e+00 : f32
      %500 = vector.broadcast %cst_187 : f32 to vector<1x128xf32>
      %501 = arith.minimumf %499, %500 : vector<1x128xf32>
      %c9_i32 = arith.constant 9 : i32
      %502 = vector.broadcast %501 : vector<1x128xf32> to vector<8x128xf32>
      %503 = arith.mulf %328, %502 : vector<8x128xf32>
      "tpu.trace_start"() <{level = 10 : i32, message = "il,jl->ij"}> : () -> ()
      %cst_188 = arith.constant dense<0.000000e+00> : vector<8x8xf32>
      %504 = tpu.matmul %503, %12, %cst_188 {dimension_numbers = #tpu.dot_dimension_numbers<[1], [1], [0], [0], [0, 0, 1, 0], [], []>} : vector<8x128xf32>, vector<8x128xf32>, vector<8x8xf32> -> vector<8x8xf32>
      "tpu.trace_stop"() : () -> ()
      %cst_189 = arith.constant dense<0.000000e+00> : vector<8x128xf32>
      %505 = tpu.matmul %504, %12, %cst_189 {dimension_numbers = #tpu.dot_dimension_numbers<[1], [0], [0], [1], [0, 0, 1, 1], [], []>} : vector<8x8xf32>, vector<8x128xf32>, vector<8x128xf32> -> vector<8x128xf32>
      %506 = tpu.reciprocal %505 {approx = true} : vector<8x128xf32> -> vector<8x128xf32>
      %507 = arith.mulf %505, %506 : vector<8x128xf32>
      %cst_190 = arith.constant 2.000000e+00 : f32
      %508 = vector.broadcast %cst_190 : f32 to vector<8x128xf32>
      %509 = arith.subf %508, %507 : vector<8x128xf32>
      %510 = arith.mulf %506, %509 : vector<8x128xf32>
      %511 = arith.mulf %328, %510 : vector<8x128xf32>
      %cst_191 = arith.constant dense<0.000000e+00> : vector<128xf32>
      %512 = vector.multi_reduction <add>, %511, %cst_191 [0] : vector<8x128xf32> to vector<128xf32>
      %513 = vector.shape_cast %512 : vector<128xf32> to vector<1x128xf32>
      %514 = tpu.reciprocal %513 {approx = true} : vector<1x128xf32> -> vector<1x128xf32>
      %515 = arith.mulf %513, %514 : vector<1x128xf32>
      %cst_192 = arith.constant 2.000000e+00 : f32
      %516 = vector.broadcast %cst_192 : f32 to vector<1x128xf32>
      %517 = arith.subf %516, %515 : vector<1x128xf32>
      %518 = arith.mulf %514, %517 : vector<1x128xf32>
      %cst_193 = arith.constant 1.000000e+00 : f32
      %519 = vector.broadcast %cst_193 : f32 to vector<1x128xf32>
      %520 = arith.minimumf %518, %519 : vector<1x128xf32>
      %c10_i32 = arith.constant 10 : i32
      %521 = vector.broadcast %520 : vector<1x128xf32> to vector<8x128xf32>
      %522 = arith.mulf %328, %521 : vector<8x128xf32>
      "tpu.trace_start"() <{level = 10 : i32, message = "il,jl->ij"}> : () -> ()
      %cst_194 = arith.constant dense<0.000000e+00> : vector<8x8xf32>
      %523 = tpu.matmul %522, %12, %cst_194 {dimension_numbers = #tpu.dot_dimension_numbers<[1], [1], [0], [0], [0, 0, 1, 0], [], []>} : vector<8x128xf32>, vector<8x128xf32>, vector<8x8xf32> -> vector<8x8xf32>
      "tpu.trace_stop"() : () -> ()
      %cst_195 = arith.constant dense<0.000000e+00> : vector<8x128xf32>
      %524 = tpu.matmul %523, %12, %cst_195 {dimension_numbers = #tpu.dot_dimension_numbers<[1], [0], [0], [1], [0, 0, 1, 1], [], []>} : vector<8x8xf32>, vector<8x128xf32>, vector<8x128xf32> -> vector<8x128xf32>
      %525 = tpu.reciprocal %524 {approx = true} : vector<8x128xf32> -> vector<8x128xf32>
      %526 = arith.mulf %524, %525 : vector<8x128xf32>
      %cst_196 = arith.constant 2.000000e+00 : f32
      %527 = vector.broadcast %cst_196 : f32 to vector<8x128xf32>
      %528 = arith.subf %527, %526 : vector<8x128xf32>
      %529 = arith.mulf %525, %528 : vector<8x128xf32>
      %530 = arith.mulf %328, %529 : vector<8x128xf32>
      %cst_197 = arith.constant dense<0.000000e+00> : vector<128xf32>
      %531 = vector.multi_reduction <add>, %530, %cst_197 [0] : vector<8x128xf32> to vector<128xf32>
      %532 = vector.shape_cast %531 : vector<128xf32> to vector<1x128xf32>
      %533 = tpu.reciprocal %532 {approx = true} : vector<1x128xf32> -> vector<1x128xf32>
      %534 = arith.mulf %532, %533 : vector<1x128xf32>
      %cst_198 = arith.constant 2.000000e+00 : f32
      %535 = vector.broadcast %cst_198 : f32 to vector<1x128xf32>
      %536 = arith.subf %535, %534 : vector<1x128xf32>
      %537 = arith.mulf %533, %536 : vector<1x128xf32>
      %cst_199 = arith.constant 1.000000e+00 : f32
      %538 = vector.broadcast %cst_199 : f32 to vector<1x128xf32>
      %539 = arith.minimumf %537, %538 : vector<1x128xf32>
      %c11_i32 = arith.constant 11 : i32
      %540 = vector.broadcast %539 : vector<1x128xf32> to vector<8x128xf32>
      %541 = arith.mulf %328, %540 : vector<8x128xf32>
      "tpu.trace_start"() <{level = 10 : i32, message = "il,jl->ij"}> : () -> ()
      %cst_200 = arith.constant dense<0.000000e+00> : vector<8x8xf32>
      %542 = tpu.matmul %541, %12, %cst_200 {dimension_numbers = #tpu.dot_dimension_numbers<[1], [1], [0], [0], [0, 0, 1, 0], [], []>} : vector<8x128xf32>, vector<8x128xf32>, vector<8x8xf32> -> vector<8x8xf32>
      "tpu.trace_stop"() : () -> ()
      %cst_201 = arith.constant dense<0.000000e+00> : vector<8x128xf32>
      %543 = tpu.matmul %542, %12, %cst_201 {dimension_numbers = #tpu.dot_dimension_numbers<[1], [0], [0], [1], [0, 0, 1, 1], [], []>} : vector<8x8xf32>, vector<8x128xf32>, vector<8x128xf32> -> vector<8x128xf32>
      %544 = tpu.reciprocal %543 {approx = true} : vector<8x128xf32> -> vector<8x128xf32>
      %545 = arith.mulf %543, %544 : vector<8x128xf32>
      %cst_202 = arith.constant 2.000000e+00 : f32
      %546 = vector.broadcast %cst_202 : f32 to vector<8x128xf32>
      %547 = arith.subf %546, %545 : vector<8x128xf32>
      %548 = arith.mulf %544, %547 : vector<8x128xf32>
      %549 = arith.mulf %328, %548 : vector<8x128xf32>
      %cst_203 = arith.constant dense<0.000000e+00> : vector<128xf32>
      %550 = vector.multi_reduction <add>, %549, %cst_203 [0] : vector<8x128xf32> to vector<128xf32>
      %551 = vector.shape_cast %550 : vector<128xf32> to vector<1x128xf32>
      %552 = tpu.reciprocal %551 {approx = true} : vector<1x128xf32> -> vector<1x128xf32>
      %553 = arith.mulf %551, %552 : vector<1x128xf32>
      %cst_204 = arith.constant 2.000000e+00 : f32
      %554 = vector.broadcast %cst_204 : f32 to vector<1x128xf32>
      %555 = arith.subf %554, %553 : vector<1x128xf32>
      %556 = arith.mulf %552, %555 : vector<1x128xf32>
      %cst_205 = arith.constant 1.000000e+00 : f32
      %557 = vector.broadcast %cst_205 : f32 to vector<1x128xf32>
      %558 = arith.minimumf %556, %557 : vector<1x128xf32>
      %c12_i32 = arith.constant 12 : i32
      %559 = vector.broadcast %558 : vector<1x128xf32> to vector<8x128xf32>
      %560 = arith.mulf %328, %559 : vector<8x128xf32>
      "tpu.trace_start"() <{level = 10 : i32, message = "il,jl->ij"}> : () -> ()
      %cst_206 = arith.constant dense<0.000000e+00> : vector<8x8xf32>
      %561 = tpu.matmul %560, %12, %cst_206 {dimension_numbers = #tpu.dot_dimension_numbers<[1], [1], [0], [0], [0, 0, 1, 0], [], []>} : vector<8x128xf32>, vector<8x128xf32>, vector<8x8xf32> -> vector<8x8xf32>
      "tpu.trace_stop"() : () -> ()
      %cst_207 = arith.constant dense<0.000000e+00> : vector<8x128xf32>
      %562 = tpu.matmul %561, %12, %cst_207 {dimension_numbers = #tpu.dot_dimension_numbers<[1], [0], [0], [1], [0, 0, 1, 1], [], []>} : vector<8x8xf32>, vector<8x128xf32>, vector<8x128xf32> -> vector<8x128xf32>
      %563 = tpu.reciprocal %562 {approx = true} : vector<8x128xf32> -> vector<8x128xf32>
      %564 = arith.mulf %562, %563 : vector<8x128xf32>
      %cst_208 = arith.constant 2.000000e+00 : f32
      %565 = vector.broadcast %cst_208 : f32 to vector<8x128xf32>
      %566 = arith.subf %565, %564 : vector<8x128xf32>
      %567 = arith.mulf %563, %566 : vector<8x128xf32>
      %568 = arith.mulf %328, %567 : vector<8x128xf32>
      %cst_209 = arith.constant dense<0.000000e+00> : vector<128xf32>
      %569 = vector.multi_reduction <add>, %568, %cst_209 [0] : vector<8x128xf32> to vector<128xf32>
      %570 = vector.shape_cast %569 : vector<128xf32> to vector<1x128xf32>
      %571 = tpu.reciprocal %570 {approx = true} : vector<1x128xf32> -> vector<1x128xf32>
      %572 = arith.mulf %570, %571 : vector<1x128xf32>
      %cst_210 = arith.constant 2.000000e+00 : f32
      %573 = vector.broadcast %cst_210 : f32 to vector<1x128xf32>
      %574 = arith.subf %573, %572 : vector<1x128xf32>
      %575 = arith.mulf %571, %574 : vector<1x128xf32>
      %cst_211 = arith.constant 1.000000e+00 : f32
      %576 = vector.broadcast %cst_211 : f32 to vector<1x128xf32>
      %577 = arith.minimumf %575, %576 : vector<1x128xf32>
      %c13_i32 = arith.constant 13 : i32
      %578 = vector.broadcast %577 : vector<1x128xf32> to vector<8x128xf32>
      %579 = arith.mulf %328, %578 : vector<8x128xf32>
      "tpu.trace_start"() <{level = 10 : i32, message = "il,jl->ij"}> : () -> ()
      %cst_212 = arith.constant dense<0.000000e+00> : vector<8x8xf32>
      %580 = tpu.matmul %579, %12, %cst_212 {dimension_numbers = #tpu.dot_dimension_numbers<[1], [1], [0], [0], [0, 0, 1, 0], [], []>} : vector<8x128xf32>, vector<8x128xf32>, vector<8x8xf32> -> vector<8x8xf32>
      "tpu.trace_stop"() : () -> ()
      %cst_213 = arith.constant dense<0.000000e+00> : vector<8x128xf32>
      %581 = tpu.matmul %580, %12, %cst_213 {dimension_numbers = #tpu.dot_dimension_numbers<[1], [0], [0], [1], [0, 0, 1, 1], [], []>} : vector<8x8xf32>, vector<8x128xf32>, vector<8x128xf32> -> vector<8x128xf32>
      %582 = tpu.reciprocal %581 {approx = true} : vector<8x128xf32> -> vector<8x128xf32>
      %583 = arith.mulf %581, %582 : vector<8x128xf32>
      %cst_214 = arith.constant 2.000000e+00 : f32
      %584 = vector.broadcast %cst_214 : f32 to vector<8x128xf32>
      %585 = arith.subf %584, %583 : vector<8x128xf32>
      %586 = arith.mulf %582, %585 : vector<8x128xf32>
      %587 = arith.mulf %328, %586 : vector<8x128xf32>
      %cst_215 = arith.constant dense<0.000000e+00> : vector<128xf32>
      %588 = vector.multi_reduction <add>, %587, %cst_215 [0] : vector<8x128xf32> to vector<128xf32>
      %589 = vector.shape_cast %588 : vector<128xf32> to vector<1x128xf32>
      %590 = tpu.reciprocal %589 {approx = true} : vector<1x128xf32> -> vector<1x128xf32>
      %591 = arith.mulf %589, %590 : vector<1x128xf32>
      %cst_216 = arith.constant 2.000000e+00 : f32
      %592 = vector.broadcast %cst_216 : f32 to vector<1x128xf32>
      %593 = arith.subf %592, %591 : vector<1x128xf32>
      %594 = arith.mulf %590, %593 : vector<1x128xf32>
      %cst_217 = arith.constant 1.000000e+00 : f32
      %595 = vector.broadcast %cst_217 : f32 to vector<1x128xf32>
      %596 = arith.minimumf %594, %595 : vector<1x128xf32>
      %c14_i32 = arith.constant 14 : i32
      %597 = vector.broadcast %596 : vector<1x128xf32> to vector<8x128xf32>
      %598 = arith.mulf %328, %597 : vector<8x128xf32>
      "tpu.trace_start"() <{level = 10 : i32, message = "il,jl->ij"}> : () -> ()
      %cst_218 = arith.constant dense<0.000000e+00> : vector<8x8xf32>
      %599 = tpu.matmul %598, %12, %cst_218 {dimension_numbers = #tpu.dot_dimension_numbers<[1], [1], [0], [0], [0, 0, 1, 0], [], []>} : vector<8x128xf32>, vector<8x128xf32>, vector<8x8xf32> -> vector<8x8xf32>
      "tpu.trace_stop"() : () -> ()
      %cst_219 = arith.constant dense<0.000000e+00> : vector<8x128xf32>
      %600 = tpu.matmul %599, %12, %cst_219 {dimension_numbers = #tpu.dot_dimension_numbers<[1], [0], [0], [1], [0, 0, 1, 1], [], []>} : vector<8x8xf32>, vector<8x128xf32>, vector<8x128xf32> -> vector<8x128xf32>
      %601 = tpu.reciprocal %600 {approx = true} : vector<8x128xf32> -> vector<8x128xf32>
      %602 = arith.mulf %600, %601 : vector<8x128xf32>
      %cst_220 = arith.constant 2.000000e+00 : f32
      %603 = vector.broadcast %cst_220 : f32 to vector<8x128xf32>
      %604 = arith.subf %603, %602 : vector<8x128xf32>
      %605 = arith.mulf %601, %604 : vector<8x128xf32>
      %606 = arith.mulf %328, %605 : vector<8x128xf32>
      %cst_221 = arith.constant dense<0.000000e+00> : vector<128xf32>
      %607 = vector.multi_reduction <add>, %606, %cst_221 [0] : vector<8x128xf32> to vector<128xf32>
      %608 = vector.shape_cast %607 : vector<128xf32> to vector<1x128xf32>
      %609 = tpu.reciprocal %608 {approx = true} : vector<1x128xf32> -> vector<1x128xf32>
      %610 = arith.mulf %608, %609 : vector<1x128xf32>
      %cst_222 = arith.constant 2.000000e+00 : f32
      %611 = vector.broadcast %cst_222 : f32 to vector<1x128xf32>
      %612 = arith.subf %611, %610 : vector<1x128xf32>
      %613 = arith.mulf %609, %612 : vector<1x128xf32>
      %cst_223 = arith.constant 1.000000e+00 : f32
      %614 = vector.broadcast %cst_223 : f32 to vector<1x128xf32>
      %615 = arith.minimumf %613, %614 : vector<1x128xf32>
      %616 = arith.mulf %605, %328 : vector<8x128xf32>
      %617 = vector.broadcast %615 : vector<1x128xf32> to vector<8x128xf32>
      %618 = arith.mulf %616, %617 : vector<8x128xf32>
      scf.yield %618 : vector<8x128xf32>
    }
    %c0_3 = arith.constant 0 : index
    %c0_4 = arith.constant 0 : index
    %16 = vector.load %arg7[%c0_3, %c0_4] : memref<8x128xf32, #tpu.memory_space<vmem>>, vector<8x128xf32>
    tpu.vector_store %arg7[%c0_3, %c0_4], %15 {strides = array<i32>} : memref<8x128xf32, #tpu.memory_space<vmem>>, vector<8x128xf32>,
    return
  }
  func.func @transform_0(%arg0: i32) -> (i32, i32) {
    %c0_i32 = arith.constant 0 : i32
    %c0_i32_0 = arith.constant 0 : i32
    return %c0_i32, %arg0 : i32, i32
  }
  func.func @transform_1(%arg0: i32) -> (i32, i32) {
    %c0_i32 = arith.constant 0 : i32
    %c0_i32_0 = arith.constant 0 : i32
    return %c0_i32, %arg0 : i32, i32
  }
  func.func @transform_2(%arg0: i32) -> (i32, i32, i32) {
    %c0_i32 = arith.constant 0 : i32
    %c0_i32_0 = arith.constant 0 : i32
    %c0_i32_1 = arith.constant 0 : i32
    return %arg0, %c0_i32, %c0_i32_0 : i32, i32, i32
  }
  func.func @transform_3(%arg0: i32) -> (i32, i32, i32) {
    %c0_i32 = arith.constant 0 : i32
    %c0_i32_0 = arith.constant 0 : i32
    %c0_i32_1 = arith.constant 0 : i32
    return %arg0, %c0_i32, %c0_i32_0 : i32, i32, i32
  }
  func.func @transform_4(%arg0: i32) -> (i32, i32, i32) {
    %c0_i32 = arith.constant 0 : i32
    %c0_i32_0 = arith.constant 0 : i32
    %c0_i32_1 = arith.constant 0 : i32
    return %arg0, %c0_i32, %c0_i32_0 : i32, i32, i32
  }
  func.func @transform_5(%arg0: i32) -> (i32, i32, i32) {
    %c0_i32 = arith.constant 0 : i32
    %c0_i32_0 = arith.constant 0 : i32
    %c0_i32_1 = arith.constant 0 : i32
    return %arg0, %c0_i32, %c0_i32_0 : i32, i32, i32
  }
  func.func @transform_6(%arg0: i32) -> (i32, i32) {
    %c0_i32 = arith.constant 0 : i32
    %c0_i32_0 = arith.constant 0 : i32
    return %c0_i32, %arg0 : i32, i32
  }
}

</mosaic_0001>

<bundles_post_ra>
// kernel: gromov_wasserstein.1
= control target key start
LH: loop header
LB: loop body
LE: loop exit
PB: predicated region body
PF: predicated region fallthrough
CT: control target
= control target key end

     0   :  { %s5252_s21 = smov 0   ;;  %s5793_s0 = inlined_call_operand.vmem [shape: f32[8,256], index: 0, kind: input, shape index: {}]   ;;  %s5794_s1 = inlined_call_operand.vmem [shape: f32[8,256], index: 1, kind: input, shape index: {}]   ;;  %s5795_s2 = inlined_call_operand.vmem [shape: f32[16,8,8], index: 2, kind: input, shape index: {}]   ;;  %s5796_s3 = inlined_call_operand.vmem [shape: f32[16,8,8], index: 3, kind: input, shape index: {}]   ;;  %s5797_s4 = inlined_call_operand.vmem [shape: f32[2,128,128], index: 4, kind: input, shape index: {}]   ;;  %s5798_s5 = inlined_call_operand.vmem [shape: f32[2,128,128], index: 5, kind: input, shape index: {}]   ;;  %s5799_s6 = inlined_call_operand.vmem [shape: f32[8,256], index: 6, kind: output, shape index: {}]  }
   0x1 LB: > { %s4440_s22 = sadd.s32 4294967295, %s5202_s21   ;;  %p4444_p0 = scmp.ge.s32.totalorder %s5202_s21, 1  ;;  %s5202_s21 = sphi %s5252_s21, %s16_s21  }
   0x2   : > { %p262_p1 = scmp.lt.s32.totalorder %s5202_s21, 3 }
   0x4   : > { %p263_p2 = pnand %p4444_p0, %p262_p1 }
   0x5   : > { %p314_p3 = scmp.lt.s32.totalorder (!%p263_p2), %s4440_s22, 1  ;;  %s4447_s23 = sshll.u32 (!%p263_p2), %s4440_s22, 3  ;;  %v348_v0 = vlaneseq (!%p263_p2) }
   0x6   : > { %266 = sbr.rel (%p263_p2) target bundleno = 8498 (0x2132), region = 44  ;;  %p323_p4 = scmp.lt.s32.totalorder (!%p263_p2), %s4447_s23, 15 }
   0x7   : > { %v5260_v1 = vand.u32 (!%p263_p2), 127, %v348_v0  ;;  %v351_v2 = vshrl.u32 (!%p263_p2), %v348_v0, 7  ;;  %s5304_s27 = smov (!%p263_p2), 0  }
   0x9   : > { %v352_v3 = vmul.u32 (!%p263_p2), 16, %v351_v2  ;;  %v354_v4 = vadd.s32 (!%p263_p2), 1, %v351_v2 }
   0xb   : > { %vm353_vm0 = vcmp.ge.s32.totalorder (!%p263_p2), %v5260_v1, %v352_v3  ;;  %v355_v5 = vmul.u32 (!%p263_p2), 16, %v354_v4 }
   0xd   : > { %s5804_s22 = smov (!%p314_p3, %s4440_s22), 1  ;;  %s5806_s23 = smov (!%p323_p4, %s4447_s23), 15  ;;  %vm356_vm1 = vcmp.lt.s32.totalorder %v5260_v1, %v355_v5 }
   0xe   : > { %s5262_s24 = sshll.u32 %s5804_s22, 3  ;;  %s4542_s25 = sshll.u32 %s5804_s22, 7  ;;  %vm5298_vm2 = vmand %vm353_vm0, %vm356_vm1 }
   0xf   : > { %s317_s28 = scalar_lea.vmem %s5793_s0, %s5262_s24  ;;  %s321_s7 = scalar_lea.vmem %s5794_s1, %s5262_s24 }
  0x10   : > { %s4448_s8 = sshll.u32 %s5806_s23, 3  ;;  %s5275_s11 = scalar_lea.vmem %s5797_s4, %s4542_s25  ;;  %v360_v6 = vld [vmem:[%s317_s28] sm:$0xff]  }
  0x11   : > { %s5281_s14 = scalar_lea.vmem %s5795_s2, %s4448_s8  ;;  %s5286_s17 = scalar_lea.vmem %s5796_s3, %s4448_s8 }
  0x12   : > { %s5291_s20 = scalar_lea.vmem %s5798_s5, %s4542_s25  ;;  %s347_s26 = scalar_lea.vmem %s5799_s6, %s5262_s24 }
  0x13 LB: >> { %v368_v8 = vld [vmem:[%s5275_s11] sm:$0xff]  ;;  %v369_v9 = vld [vmem:[%s5275_s11 + $0x8] sm:$0xff]  ;;  %v5212_v11 = vmov 0.0|0.0   ;;  %v370_v14 = vld [vmem:[%s5275_s11 + $0x10] sm:$0xff]  ;;  %vm5213_vm3 = vmmov 0   ;;  %v5214_v19 = vmov 0.0   ;;  %s5210_s27 = sphi %s5304_s27, %s366_s27   ;;  %v5206_v6 = vphi %v360_v6, %v5802_v6  }
  0x14   : >> { %v454_v10 = vld [vmem:[%s5291_s20] sm:$0xff]  ;;  %4970 = vmatprep.subr.bf16.mxu0 %v5212_v11  ;;  %v4971_v12 = vpack.c.bf16 %v369_v9, %v368_v8  ;;  %4994 = vmatprep.subr.bf16.mxu1 %v5212_v11  ;;  %v455_v13 = vld [vmem:[%s5291_s20 + $0x8] sm:$0xff]  ;;  %v371_v15 = vld [vmem:[%s5275_s11 + $0x18] sm:$0xff]  ;;  %vm542_vm4 = vcmp.lt.s32.totalorder %v5260_v1, 16  ;;  %vm548_vm5 = vcmask 64512   ;;  %vm699_vm6 = vcmp.ge.s32.totalorder %v5260_v1, 16 }
  0x15   : >> { %v4995_v16 = vpack.c.bf16 %v455_v13, %v454_v10  ;;  %v456_v17 = vld [vmem:[%s5291_s20 + $0x10] sm:$0xff]  ;;  %v457_v18 = vld [vmem:[%s5291_s20 + $0x18] sm:$0xff]  ;;  %4702 = vmatprep.mubr.msk.f32.mxu0 %vm5213_vm3, %v5214_v19  ;;  %4737 = vmatprep.mubr.msk.f32.mxu1 %vm5213_vm3, %v5214_v19  ;;  %v4974_v20 = vpack.c.bf16 %v371_v15, %v370_v14  ;;  %v372_v22 = vld [vmem:[%s5275_s11 + $0x20] sm:$0xff]  ;;  %v5374_v58 = vsel %vm542_vm4, 1.0, %v5214_v19  ;;  %vm700_vm7 = vcmp.lt.s32.totalorder %v5260_v1, 32  ;;  %s366_s27 = sadd.s32 1, %s5210_s27  }
  0x16   : >> { %4972 = vmatpush3.bf16.msra.mxu0 %v4971_v12  ;;  %v4998_v21 = vpack.c.bf16 %v457_v18, %v456_v17  ;;  %v373_v23 = vld [vmem:[%s5275_s11 + $0x28] sm:$0xff]  ;;  %v458_v24 = vld [vmem:[%s5291_s20 + $0x20] sm:$0xff]  ;;  %v374_v28 = vld [vmem:[%s5275_s11 + $0x30] sm:$0xff]  ;;  %vm858_vm9 = vcmp.ge.s32.totalorder %v5260_v1, 32  ;;  %vm859_vm10 = vcmp.lt.s32.totalorder %v5260_v1, 48  ;;  %vm1017_vm12 = vcmp.ge.s32.totalorder %v5260_v1, 48 }
  0x17   : >> { %4973 = vmatprep.subr.bf16.mxu0 %v5212_v11  ;;  %4996 = vmatpush3.bf16.msra.mxu1 %v4995_v16  ;;  %v459_v25 = vld [vmem:[%s5291_s20 + $0x28] sm:$0xff]  ;;  %v4977_v26 = vpack.c.bf16 %v373_v23, %v372_v22  ;;  %v375_v29 = vld [vmem:[%s5275_s11 + $0x38] sm:$0xff]  ;;  %v460_v30 = vld [vmem:[%s5291_s20 + $0x30] sm:$0xff]  ;;  %vm1018_vm13 = vcmp.lt.s32.totalorder %v5260_v1, 64  ;;  %vm1176_vm15 = vcmp.ge.s32.totalorder %v5260_v1, 64  ;;  %vm1177_vm0 = vcmp.lt.s32.totalorder %v5260_v1, 80 }
  0x18   : >> { %4997 = vmatprep.subr.bf16.mxu1 %v5212_v11  ;;  %v5001_v27 = vpack.c.bf16 %v459_v25, %v458_v24  ;;  %v461_v31 = vld [vmem:[%s5291_s20 + $0x38] sm:$0xff]  ;;  %v4980_v32 = vpack.c.bf16 %v375_v29, %v374_v28  ;;  %v376_v34 = vld [vmem:[%s5275_s11 + $0x40] sm:$0xff]  ;;  %v377_v35 = vld [vmem:[%s5275_s11 + $0x48] sm:$0xff]  ;;  %vm1335_vm4 = vcmp.ge.s32.totalorder %v5260_v1, 80  ;;  %s5215_s30 = smov 1e-30  }
  0x19   : >> { %v5004_v33 = vpack.c.bf16 %v461_v31, %v460_v30  ;;  %v462_v36 = vld [vmem:[%s5291_s20 + $0x40] sm:$0xff]  ;;  %v463_v37 = vld [vmem:[%s5291_s20 + $0x48] sm:$0xff]  ;;  %v4983_v38 = vpack.c.bf16 %v377_v35, %v376_v34  ;;  %v378_v40 = vld [vmem:[%s5275_s11 + $0x50] sm:$0xff]  ;;  %p363_p5 = scmp.ge.s32.totalorder %s366_s27, 15  }
  0x1a   : >> { %4975 = vmatpush3.bf16.msra.mxu0 %v4974_v20  ;;  %v5007_v39 = vpack.c.bf16 %v463_v37, %v462_v36  ;;  %v379_v41 = vld [vmem:[%s5275_s11 + $0x58] sm:$0xff]  ;;  %v464_v42 = vld [vmem:[%s5291_s20 + $0x50] sm:$0xff]  ;;  %v380_v46 = vld [vmem:[%s5275_s11 + $0x60] sm:$0xff] }
  0x1b   : >> { %4976 = vmatprep.subr.bf16.mxu0 %v5212_v11  ;;  %4999 = vmatpush3.bf16.msra.mxu1 %v4998_v21  ;;  %v465_v43 = vld [vmem:[%s5291_s20 + $0x58] sm:$0xff]  ;;  %v4986_v44 = vpack.c.bf16 %v379_v41, %v378_v40  ;;  %v381_v47 = vld [vmem:[%s5275_s11 + $0x68] sm:$0xff]  ;;  %v466_v48 = vld [vmem:[%s5291_s20 + $0x60] sm:$0xff] }
  0x1c   : >> { %5000 = vmatprep.subr.bf16.mxu1 %v5212_v11  ;;  %v5010_v45 = vpack.c.bf16 %v465_v43, %v464_v42  ;;  %v467_v49 = vld [vmem:[%s5291_s20 + $0x68] sm:$0xff]  ;;  %v4989_v50 = vpack.c.bf16 %v381_v47, %v380_v46  ;;  %v382_v52 = vld [vmem:[%s5275_s11 + $0x70] sm:$0xff]  ;;  %v383_v53 = vld [vmem:[%s5275_s11 + $0x78] sm:$0xff] }
  0x1d   : >> { %v5013_v51 = vpack.c.bf16 %v467_v49, %v466_v48  ;;  %v468_v54 = vld [vmem:[%s5291_s20 + $0x70] sm:$0xff]  ;;  %v469_v55 = vld [vmem:[%s5291_s20 + $0x78] sm:$0xff]  ;;  %v4992_v56 = vpack.c.bf16 %v383_v53, %v382_v52  ;;  %v546_v63 = vld [vmem:[%s5281_s14] sm:$0xff] }
  0x1e   : >> { %4978 = vmatpush3.bf16.msra.mxu0 %v4977_v26  ;;  %v5016_v57 = vpack.c.bf16 %v469_v55, %v468_v54  ;;  %vm701_vm8 = vmand %vm699_vm6, %vm700_vm7  ;;  %v623_v4 = vld [vmem:[%s5286_s17] sm:$0xff]  ;;  %v4463_v10 = vld [vmem:[%s5286_s17 + $0x8] sm:$0xff]  ;;  %vm1336_vm6 = vcmp.lt.s32.totalorder %v5260_v1, 96 }
  0x1f   : >> { %4979 = vmatprep.subr.bf16.mxu0 %v5212_v11  ;;  %5002 = vmatpush3.bf16.msra.mxu1 %v5001_v27  ;;  %v5393_v3 = vsel %vm701_vm8, 1.0, %v5214_v19  ;;  %vm860_vm11 = vmand %vm858_vm9, %vm859_vm10  ;;  %v4466_v12 = vld [vmem:[%s5281_s14 + $0x10] sm:$0xff]  ;;  %v4471_v17 = vld [vmem:[%s5281_s14 + $0x18] sm:$0xff]  ;;  %vm1494_vm8 = vcmp.ge.s32.totalorder %v5260_v1, 96  ;;  %vm1495_vm9 = vcmp.lt.s32.totalorder %v5260_v1, 112 }
  0x20   : >> { %5003 = vmatprep.subr.bf16.mxu1 %v5212_v11  ;;  %v5412_v9 = vsel %vm860_vm11, 1.0, %v5214_v19  ;;  %vm1019_vm14 = vmand %vm1017_vm12, %vm1018_vm13  ;;  %v4468_v15 = vld [vmem:[%s5286_s17 + $0x10] sm:$0xff]  ;;  %v4473_v21 = vld [vmem:[%s5286_s17 + $0x18] sm:$0xff]  ;;  %vm1653_vm11 = vcmp.ge.s32.totalorder %v5260_v1, 112 }
  0x21   : >> { %v5431_v14 = vsel %vm1019_vm14, 1.0, %v5214_v19  ;;  %vm1178_vm1 = vmand %vm1176_vm15, %vm1177_vm0  ;;  %v4476_v23 = vld [vmem:[%s5281_s14 + $0x20] sm:$0xff]  ;;  %v4481_v28 = vld [vmem:[%s5281_s14 + $0x28] sm:$0xff]  ;;  %v5506_v35 = vsel %vm1653_vm11, 1.0, %v5214_v19 }
  0x22   : >> { %4981 = vmatpush3.bf16.msra.mxu0 %v4980_v32  ;;  %v5450_v20 = vsel %vm1178_vm1, 1.0, %v5214_v19  ;;  %vm1337_vm7 = vmand %vm1335_vm4, %vm1336_vm6  ;;  %v4478_v26 = vld [vmem:[%s5286_s17 + $0x20] sm:$0xff]  ;;  %v4483_v31 = vld [vmem:[%s5286_s17 + $0x28] sm:$0xff] }
  0x23   : >> { %4982 = vmatprep.subr.bf16.mxu0 %v5212_v11  ;;  %5005 = vmatpush3.bf16.msra.mxu1 %v5004_v33  ;;  %v5469_v25 = vsel %vm1337_vm7, 1.0, %v5214_v19  ;;  %vm1496_vm10 = vmand %vm1494_vm8, %vm1495_vm9  ;;  %v4486_v33 = vld [vmem:[%s5281_s14 + $0x30] sm:$0xff]  ;;  %v4493_v40 = vld [vmem:[%s5286_s17 + $0x38] sm:$0xff] }
  0x24   : >> { %5006 = vmatprep.subr.bf16.mxu1 %v5212_v11  ;;  %v5488_v30 = vsel %vm1496_vm10, 1.0, %v5214_v19  ;;  %v4488_v36 = vld [vmem:[%s5286_s17 + $0x30] sm:$0xff]  ;;  %v540_v41 = vld [vmem:[%s321_s7] sm:$0xff] }
  0x26   : >> { %4984 = vmatpush3.bf16.msra.mxu0 %v4983_v38  ;;  %v4491_v38 = vld [vmem:[%s5281_s14 + $0x38] sm:$0xff] }
  0x27   : >> { %4985 = vmatprep.subr.bf16.mxu0 %v5212_v11  ;;  %5008 = vmatpush3.bf16.msra.mxu1 %v5007_v39 }
  0x28   : >> { %5009 = vmatprep.subr.bf16.mxu1 %v5212_v11 }
  0x2a   : >> { %4987 = vmatpush3.bf16.msra.mxu0 %v4986_v44 }
  0x2b   : >> { %4988 = vmatprep.subr.bf16.mxu0 %v5212_v11  ;;  %5011 = vmatpush3.bf16.msra.mxu1 %v5010_v45 }
  0x2c   : >> { %5012 = vmatprep.subr.bf16.mxu1 %v5212_v11 }
  0x2e   : >> { %4990 = vmatpush3.bf16.msra.mxu0 %v4989_v50 }
  0x2f   : >> { %4991 = vmatprep.subr.bf16.mxu0 %v5212_v11  ;;  %5014 = vmatpush3.bf16.msra.mxu1 %v5013_v51 }
  0x30   : >> { %5015 = vmatprep.subr.bf16.mxu1 %v5212_v11 }
  0x32   : >> { %4993 = vmatpush3.bf16.msra.mxu0 %v4992_v56 }
  0x33   : >> { %5017 = vmatpush3.bf16.msra.mxu1 %v5016_v57  ;;  %4740 = vmatprep.subr.mxu0 %v5214_v19 }
  0x34   : >> { %4820 = vmatprep.subr.mxu1 %v5214_v19 }
  0x35   : >> { %4703 = vmatmul.mubr.f32.vlgmr.msra.gmra.mrb[0].mxu0 %v5206_v6 }
  0x36   : >> { %4738 = vmatmul.mubr.f32.vlgmr.msra.gmra.mrb[0].mxu1 %v5206_v6  ;;  %4742 = vmatprep.mubr.msk.f32.mxu0 %vm5213_vm3, %v5214_v19  ;;  %v4461_v6 = vld [vmem:[%s5281_s14 + $0x8] sm:$0xff] }
  0x37   : >> { %4822 = vmatprep.mubr.msk.f32.mxu1 %vm5213_vm3, %v5214_v19 }
 0x108   : >> { %v5376_v59 = vpop.f32.mrb[0].mxu0 }
 0x109   : >> { %v4704_v60 = vpop.f32.mrb[1].mxu0  ;;  %v5378_v61 = vpop.f32.mrb[0].mxu1  ;;  %v547_v62 = vmul.f32 %v5374_v58, %v5376_v59  ;;  %v706_v5 = vmul.f32 %v5393_v3, %v5376_v59  ;;  %v865_v11 = vmul.f32 %v5412_v9, %v5376_v59  ;;  %v1024_v16 = vmul.f32 %v5431_v14, %v5376_v59 }
 0x10a   : >> { %v4739_v0 = vpop.f32.mrb[1].mxu1  ;;  %v624_v2 = vmul.f32 %v5374_v58, %v5378_v61  ;;  %v783_v8 = vmul.f32 %v5393_v3, %v5378_v61  ;;  %v942_v13 = vmul.f32 %v5412_v9, %v5378_v61  ;;  %v1101_v18 = vmul.f32 %v5431_v14, %v5378_v61 }
 0x10b   : >> { %4741 = vmatpush3.msra.mxu0 %v547_v62  ;;  %v1183_v22 = vmul.f32 %v5450_v20, %v5376_v59  ;;  %v1260_v24 = vmul.f32 %v5450_v20, %v5378_v61  ;;  %v1342_v27 = vmul.f32 %v5469_v25, %v5376_v59  ;;  %v1419_v29 = vmul.f32 %v5469_v25, %v5378_v61 }
 0x10c   : >> { %4743 = vmatmul.mubr.msk.f32.vlgmr.msra.gmra.mrb[2].mxu0 %vm548_vm5, %v546_v63  ;;  %4745 = vmatprep.subr.mxu0 %v5214_v19  ;;  %v1501_v32 = vmul.f32 %v5488_v30, %v5376_v59  ;;  %v1578_v34 = vmul.f32 %v5488_v30, %v5378_v61  ;;  %v1660_v37 = vmul.f32 %v5506_v35, %v5376_v59 }
 0x10d   : >> { %4746 = vmatpush3.msra.mxu0 %v624_v2  ;;  %4747 = vmatprep.mubr.msk.f32.mxu0 %vm5213_vm3, %v5214_v19  ;;  %v1737_v39 = vmul.f32 %v5506_v35, %v5378_v61 }
 0x10e   : >> { %4750 = vmatprep.subr.mxu0 %v5214_v19 }
 0x114   : >> { %4748 = vmatmul.mubr.msk.f32.vlgmr.msra.gmra.mrb[2].mxu0 %vm548_vm5, %v623_v4 }
 0x115   : >> { %4751 = vmatpush3.msra.mxu0 %v706_v5  ;;  %4752 = vmatprep.mubr.msk.f32.mxu0 %vm5213_vm3, %v5214_v19 }
 0x116   : >> { %4755 = vmatprep.subr.mxu0 %v5214_v19 }
 0x11c   : >> { %4753 = vmatmul.mubr.msk.f32.vlgmr.msra.gmra.mrb[2].mxu0 %vm548_vm5, %v4461_v6 }
 0x11d   : >> { %4756 = vmatpush3.msra.mxu0 %v783_v8  ;;  %4757 = vmatprep.mubr.msk.f32.mxu0 %vm5213_vm3, %v5214_v19 }
 0x11e   : >> { %4760 = vmatprep.subr.mxu0 %v5214_v19 }
 0x124   : >> { %4758 = vmatmul.mubr.msk.f32.vlgmr.msra.gmra.mrb[2].mxu0 %vm548_vm5, %v4463_v10 }
 0x125   : >> { %4761 = vmatpush3.msra.mxu0 %v865_v11  ;;  %4762 = vmatprep.mubr.msk.f32.mxu0 %vm5213_vm3, %v5214_v19 }
 0x126   : >> { %4765 = vmatprep.subr.mxu0 %v5214_v19 }
 0x12c   : >> { %4763 = vmatmul.mubr.msk.f32.vlgmr.msra.gmra.mrb[2].mxu0 %vm548_vm5, %v4466_v12 }
 0x12d   : >> { %4766 = vmatpush3.msra.mxu0 %v942_v13  ;;  %4767 = vmatprep.mubr.msk.f32.mxu0 %vm5213_vm3, %v5214_v19 }
 0x12e   : >> { %4770 = vmatprep.subr.mxu0 %v5214_v19 }
 0x134   : >> { %4768 = vmatmul.mubr.msk.f32.vlgmr.msra.gmra.mrb[2].mxu0 %vm548_vm5, %v4468_v15 }
 0x135   : >> { %4771 = vmatpush3.msra.mxu0 %v1024_v16  ;;  %4772 = vmatprep.mubr.msk.f32.mxu0 %vm5213_vm3, %v5214_v19 }
 0x136   : >> { %4775 = vmatprep.subr.mxu0 %v5214_v19 }
 0x13c   : >> { %4773 = vmatmul.mubr.msk.f32.vlgmr.msra.gmra.mrb[2].mxu0 %vm548_vm5, %v4471_v17 }
 0x13d   : >> { %4776 = vmatpush3.msra.mxu0 %v1101_v18  ;;  %4777 = vmatprep.mubr.msk.f32.mxu0 %vm5213_vm3, %v5214_v19 }
 0x13e   : >> { %4780 = vmatprep.subr.mxu0 %v5214_v19 }
 0x144   : >> { %4778 = vmatmul.mubr.msk.f32.vlgmr.msra.gmra.mrb[2].mxu0 %vm548_vm5, %v4473_v21 }
 0x145   : >> { %4781 = vmatpush3.msra.mxu0 %v1183_v22  ;;  %4782 = vmatprep.mubr.msk.f32.mxu0 %vm5213_vm3, %v5214_v19 }
 0x146   : >> { %4785 = vmatprep.subr.mxu0 %v5214_v19 }
 0x14c   : >> { %4783 = vmatmul.mubr.msk.f32.vlgmr.msra.gmra.mrb[2].mxu0 %vm548_vm5, %v4476_v23 }
 0x14d   : >> { %4786 = vmatpush3.msra.mxu0 %v1260_v24  ;;  %4787 = vmatprep.mubr.msk.f32.mxu0 %vm5213_vm3, %v5214_v19 }
 0x14e   : >> { %4790 = vmatprep.subr.mxu0 %v5214_v19 }
 0x154   : >> { %4788 = vmatmul.mubr.msk.f32.vlgmr.msra.gmra.mrb[2].mxu0 %vm548_vm5, %v4478_v26 }
 0x155   : >> { %4791 = vmatpush3.msra.mxu0 %v1342_v27  ;;  %4792 = vmatprep.mubr.msk.f32.mxu0 %vm5213_vm3, %v5214_v19 }
 0x156   : >> { %4795 = vmatprep.subr.mxu0 %v5214_v19 }
 0x15c   : >> { %4793 = vmatmul.mubr.msk.f32.vlgmr.msra.gmra.mrb[2].mxu0 %vm548_vm5, %v4481_v28 }
 0x15d   : >> { %4796 = vmatpush3.msra.mxu0 %v1419_v29  ;;  %4797 = vmatprep.mubr.msk.f32.mxu0 %vm5213_vm3, %v5214_v19 }
 0x15e   : >> { %4800 = vmatprep.subr.mxu0 %v5214_v19 }
 0x164   : >> { %4798 = vmatmul.mubr.msk.f32.vlgmr.msra.gmra.mrb[2].mxu0 %vm548_vm5, %v4483_v31 }
 0x165   : >> { %4801 = vmatpush3.msra.mxu0 %v1501_v32  ;;  %4802 = vmatprep.mubr.msk.f32.mxu0 %vm5213_vm3, %v5214_v19 }
 0x166   : >> { %4805 = vmatprep.subr.mxu0 %v5214_v19 }
 0x16c   : >> { %4803 = vmatmul.mubr.msk.f32.vlgmr.msra.gmra.mrb[2].mxu0 %vm548_vm5, %v4486_v33 }
 0x16d   : >> { %4806 = vmatpush3.msra.mxu0 %v1578_v34  ;;  %4807 = vmatprep.mubr.msk.f32.mxu0 %vm5213_vm3, %v5214_v19 }
 0x16e   : >> { %4810 = vmatprep.subr.mxu0 %v5214_v19 }
 0x174   : >> { %4808 = vmatmul.mubr.msk.f32.vlgmr.msra.gmra.mrb[2].mxu0 %vm548_vm5, %v4488_v36 }
 0x175   : >> { %4811 = vmatpush3.msra.mxu0 %v1660_v37  ;;  %4812 = vmatprep.mubr.msk.f32.mxu0 %vm5213_vm3, %v5214_v19 }
 0x176   : >> { %4815 = vmatprep.subr.mxu0 %v5214_v19 }
 0x17c   : >> { %4813 = vmatmul.mubr.msk.f32.vlgmr.msra.gmra.mrb[2].mxu0 %vm548_vm5, %v4491_v38 }
 0x17d   : >> { %4816 = vmatpush3.msra.mxu0 %v1737_v39  ;;  %4817 = vmatprep.mubr.msk.f32.mxu0 %vm5213_vm3, %v5214_v19  ;;  %v5216_v39 = vmov 1.0  }
 0x17e   : >> { %4900 = vmatprep.subr.mxu0 %v5214_v19  ;;  %4821 = vmatpush3.xpose.msk.msra.mxu1 %vm5298_vm2, %v5216_v39 }
 0x17f   : >> { %4825 = vmatprep.subr.mxu1 %v5214_v19 }
 0x184   : >> { %4818 = vmatmul.mubr.msk.f32.vlgmr.msra.gmra.mrb[2].mxu0 %vm548_vm5, %v4493_v40 }
 0x185   : >> { %4902 = vmatprep.mubr.msk.f32.mxu0 %vm5213_vm3, %v5214_v19  ;;  %4901 = vmatpush3.xpose.msk.msra.mxu0 %vm5298_vm2, %v5216_v39 }
 0x186   : >> { %4910 = vmatprep.subr.mxu0 %v5214_v19 }
 0x257   : >> { %v1807_v42 = vpop.f32.mrb[2].mxu0 }
 0x258   : >> { %v5531_v43 = vadd.f32 %v1807_v42, %v540_v41  ;;  %v4819_v44 = vpop.f32.mrb[3].mxu0 }
 0x25a   : >> { %v1812_v45 = vand.u32 2147483647, %v5531_v43 }
 0x25c   : >> { %v1813_v46 = vrot.slane %v1812_v45, 4 }
 0x25e   : >> { %v1814_v47 = vmax.f32 %v1812_v45, %v1813_v46 }
 0x260   : >> { %v1815_v48 = vrot.slane %v1814_v47, 2 }
 0x262   : >> { %v1816_v49 = vmax.f32 %v1814_v47, %v1815_v48 }
 0x264   : >> { %v1817_v50 = vrot.slane %v1816_v49, 1 }
 0x266   : >> { %v1818_v51 = vmax.f32 %v1816_v49, %v1817_v50 }
 0x268   : >> { %v1843_v52 = vmul.f32 %v5412_v9, %v1818_v51  ;;  %v1819_v53 = vmul.f32 %v5374_v58, %v1818_v51  ;;  %v1855_v54 = vmul.f32 %v5431_v14, %v1818_v51  ;;  %v1831_v55 = vmul.f32 %v5393_v3, %v1818_v51 }
 0x269   : >> { %v1879_v56 = vmul.f32 %v5469_v25, %v1818_v51  ;;  %v1867_v57 = vmul.f32 %v5450_v20, %v1818_v51  ;;  %v1903_v59 = vmul.f32 %v5506_v35, %v1818_v51  ;;  %v1891_v60 = vmul.f32 %v5488_v30, %v1818_v51 }
 0x26a   : >> { %1844 = vmax.xlane.f32.xlu1 %v1843_v52  ;;  %1820 = vmax.xlane.f32.xlu0 %v1819_v53 }
 0x26e   : >> { %1856 = vmax.xlane.f32.xlu1 %v1855_v54  ;;  %1832 = vmax.xlane.f32.xlu0 %v1831_v55 }
 0x272   : >> { %1880 = vmax.xlane.f32.xlu1 %v1879_v56  ;;  %1868 = vmax.xlane.f32.xlu0 %v1867_v57 }
 0x276   : >> { %1904 = vmax.xlane.f32.xlu1 %v1903_v59  ;;  %1892 = vmax.xlane.f32.xlu0 %v1891_v60 }
 0x2f7   : >> { %v1821_v61 = vpop.xlane.xlu0 %1820  ;;  %v1845_v5 = vpop.xlane.xlu1 %1844 }
 0x2f8   : >> { %5049 = vpush %v1821_v61 }
 0x2fb   : >> { %v1833_v0 = vpop.xlane.xlu0 %1832  ;;  %v1857_v16 = vpop.xlane.xlu1 %1856 }
 0x2ff   : >> { %v1869_v22 = vpop.xlane.xlu0 %1868  ;;  %v1881_v28 = vpop.xlane.xlu1 %1880 }
 0x303   : >> { %v1893_v34 = vpop.xlane.xlu0 %1892 }
 0x329   : >> { %s5050_s29 = spop %5049 }
 0x32a   : >> { %s1823_s8 = smax.f32 %s5215_s30, %s5050_s29 }
 0x32b   : >> { %s1824_s9 = smul.f32 0.1, %s1823_s8 }
 0x32d   : >> { %v1825_v62 = vstv %s1824_s9 }
 0x32e   : >> { %5110 = vrcp.f32 %v1825_v62 }
 0x338   : >> { %v5111_v63 = vpop.eup %5110 }
 0x339   : >> { %5051 = vpush %v5111_v63 }
 0x33a   : >> { %5053 = vpush %v1833_v0 }
 0x36a   : >> { %s5052_s10 = spop %5051 }
 0x36b   : >> { %s5054_s12 = spop %5053  ;;  %v1828_v6 = vstv %s5052_s10 }
 0x36c   : >> { %s1835_s13 = smax.f32 %s5215_s30, %s5054_s12  ;;  %v1829_v10 = vmul.f32 %v5374_v58, %v1828_v6 }
 0x36d   : >> { %s1836_s15 = smul.f32 0.1, %s1835_s13 }
 0x36f   : >> { %v1837_v2 = vstv %s1836_s15 }
 0x370   : >> { %5112 = vrcp.f32 %v1837_v2 }
 0x37a   : >> { %v5113_v4 = vpop.eup %5112 }
 0x37b   : >> { %5055 = vpush %v5113_v4 }
 0x37c   : >> { %5057 = vpush %v1845_v5 }
 0x3ac   : >> { %s5056_s16 = spop %5055 }
 0x3ad   : >> { %v1840_v8 = vstv %s5056_s16  ;;  %s5058_s18 = spop %5057 }
 0x3ae   : >> { %v1841_v11 = vmul.f32 %v5393_v3, %v1840_v8  ;;  %s1847_s19 = smax.f32 %s5215_s30, %s5058_s18 }
 0x3af   : >> { %s1848_s22 = smul.f32 0.1, %s1847_s19 }
 0x3b0   : >> { %v1842_v12 = vadd.f32 %v1841_v11, %v1829_v10 }
 0x3b1   : >> { %v1849_v13 = vstv %s1848_s22 }
 0x3b2   : >> { %5114 = vrcp.f32 %v1849_v13 }
 0x3bc   : >> { %v5115_v15 = vpop.eup %5114 }
 0x3bd   : >> { %5059 = vpush %v5115_v15 }
 0x3be   : >> { %5061 = vpush %v1857_v16 }
 0x3ee   : >> { %s5060_s23 = spop %5059 }
 0x3ef   : >> { %v1852_v17 = vstv %s5060_s23  ;;  %s5062_s25 = spop %5061 }
 0x3f0   : >> { %v1853_v18 = vmul.f32 %v5412_v9, %v1852_v17  ;;  %s1859_s28 = smax.f32 %s5215_s30, %s5062_s25 }
 0x3f1   : >> { %s1860_s29 = smul.f32 0.1, %s1859_s28 }
 0x3f2   : >> { %v1854_v58 = vadd.f32 %v1853_v18, %v1842_v12 }
 0x3f3   : >> { %v1861_v3 = vstv %s1860_s29 }
 0x3f4   : >> { %5116 = vrcp.f32 %v1861_v3 }
 0x3fe   : >> { %v5117_v21 = vpop.eup %5116 }
 0x3ff   : >> { %5063 = vpush %v5117_v21 }
 0x400   : >> { %5065 = vpush %v1869_v22 }
 0x430   : >> { %s5064_s8 = spop %5063 }
 0x431   : >> { %v1864_v23 = vstv %s5064_s8  ;;  %s5066_s9 = spop %5065 }
 0x432   : >> { %v1865_v24 = vmul.f32 %v5431_v14, %v1864_v23  ;;  %s1871_s10 = smax.f32 %s5215_s30, %s5066_s9 }
 0x433   : >> { %s1872_s12 = smul.f32 0.1, %s1871_s10 }
 0x434   : >> { %v1866_v26 = vadd.f32 %v1865_v24, %v1854_v58 }
 0x435   : >> { %v1873_v9 = vstv %s1872_s12 }
 0x436   : >> { %5118 = vrcp.f32 %v1873_v9 }
 0x440   : >> { %v5119_v27 = vpop.eup %5118 }
 0x441   : >> { %5067 = vpush %v5119_v27 }
 0x442   : >> { %5069 = vpush %v1881_v28 }
 0x472   : >> { %s5068_s13 = spop %5067 }
 0x473   : >> { %v1876_v29 = vstv %s5068_s13  ;;  %s5070_s15 = spop %5069 }
 0x474   : >> { %v1877_v31 = vmul.f32 %v5450_v20, %v1876_v29  ;;  %s1883_s16 = smax.f32 %s5215_s30, %s5070_s15 }
 0x475   : >> { %s1884_s18 = smul.f32 0.1, %s1883_s16 }
 0x476   : >> { %v1878_v32 = vadd.f32 %v1877_v31, %v1866_v26 }
 0x477   : >> { %v1885_v14 = vstv %s1884_s18 }
 0x478   : >> { %5120 = vrcp.f32 %v1885_v14 }
 0x482   : >> { %v5121_v33 = vpop.eup %5120 }
 0x483   : >> { %5071 = vpush %v5121_v33 }
 0x484   : >> { %5073 = vpush %v1893_v34 }
 0x4b4   : >> { %s5072_s19 = spop %5071 }
 0x4b5   : >> { %v1888_v36 = vstv %s5072_s19  ;;  %s5074_s22 = spop %5073 }
 0x4b6   : >> { %v1889_v37 = vmul.f32 %v5469_v25, %v1888_v36  ;;  %s1895_s23 = smax.f32 %s5215_s30, %s5074_s22  ;;  %v1905_v25 = vpop.xlane.xlu1 %1904 }
 0x4b7   : >> { %s1896_s25 = smul.f32 0.1, %s1895_s23 }
 0x4b8   : >> { %v1890_v38 = vadd.f32 %v1889_v37, %v1878_v32 }
 0x4b9   : >> { %v1897_v20 = vstv %s1896_s25 }
 0x4ba   : >> { %5122 = vrcp.f32 %v1897_v20 }
 0x4c4   : >> { %v5123_v40 = vpop.eup %5122 }
 0x4c5   : >> { %5075 = vpush %v5123_v40 }
 0x4c6   : >> { %5077 = vpush %v1905_v25 }
 0x4f6   : >> { %s5076_s28 = spop %5075 }
 0x4f7   : >> { %s5078_s29 = spop %5077  ;;  %v1900_v44 = vstv %s5076_s28 }
 0x4f8   : >> { %s1907_s8 = smax.f32 %s5215_s30, %s5078_s29  ;;  %v1901_v45 = vmul.f32 %v5488_v30, %v1900_v44 }
 0x4f9   : >> { %s1908_s9 = smul.f32 0.1, %s1907_s8 }
 0x4fa   : >> { %v1902_v47 = vadd.f32 %v1901_v45, %v1890_v38 }
 0x4fb   : >> { %v1909_v41 = vstv %s1908_s9 }
 0x4fc   : >> { %5124 = vrcp.f32 %v1909_v41 }
 0x506   : >> { %v5125_v42 = vpop.eup %5124 }
 0x507   : >> { %5079 = vpush %v5125_v42 }
 0x538   : >> { %s5080_s10 = spop %5079 }
 0x539   : >> { %v1912_v46 = vstv %s5080_s10 }
 0x53a   : >> { %v1913_v48 = vmul.f32 %v5506_v35, %v1912_v46 }
 0x53c   : >> { %v1914_v49 = vadd.f32 %v1913_v48, %v1902_v47 }
 0x53e   : >> { %v1915_v50 = vmul.f32 %v5531_v43, %v1914_v49 }
 0x540   : >> { %v1916_v51 = vmul.f32 1.442695, %v1915_v50 }
 0x542   : >> { %5126 = vpow2.f32 %v1916_v51 }
 0x54c   : >> { %v5567_v52 = vpop.eup %5126 }
 0x54d   : >> { %4823 = vmatmul.mubr.f32.vlgmr.msra.gmra.mrb[2].mxu1 %v5567_v52 }
 0x54e   : >> { %4826 = vmatpush3.msk.msra.mxu1 %vm5298_vm2, %v5216_v39  ;;  %4827 = vmatprep.mubr.msk.f32.mxu1 %vm5213_vm3, %v5214_v19 }
 0x54f   : >> { %4830 = vmatprep.subr.mxu1 %v5214_v19 }
 0x620   : >> { %v1984_v30 = vpop.f32.mrb[2].mxu1 }
 0x621   : >> { %v4824_v35 = vpop.f32.mrb[3].mxu1  ;;  %4828 = vmatmul.mubr.msk.f32.vlgmr.msra.gmra.mrb[4].mxu1 %vm548_vm5, %v1984_v30 }
 0x622   : >> { %4831 = vmatpush3.xpose.msk.msra.mxu1 %vm5298_vm2, %v5216_v39  ;;  %4832 = vmatprep.mubr.msk.f32.mxu1 %vm5213_vm3, %v5214_v19 }
 0x623   : >> { %4835 = vmatprep.subr.mxu1 %v5214_v19 }
 0x6f4   : >> { %v2057_v43 = vpop.f32.mrb[4].mxu1 }
 0x6f5   : >> { %5128 = vrcp.f32 %v2057_v43  ;;  %v4829_v53 = vpop.f32.mrb[5].mxu1 }
 0x6ff   : >> { %v5129_v54 = vpop.eup %5128 }
 0x700   : >> { %v2062_v55 = vmul.f32 %v5129_v54, %v2057_v43 }
 0x702   : >> { %v2063_v56 = vsub.f32 2.0, %v2062_v55 }
 0x704   : >> { %v2064_v57 = vmul.f32 %v5129_v54, %v2063_v56 }
 0x706   : >> { %v2065_v59 = vmul.f32 %v5567_v52, %v2064_v57 }
 0x708   : >> { %v2066_v60 = vrot.slane %v2065_v59, 4 }
 0x70a   : >> { %v2067_v61 = vadd.f32 %v2066_v60, %v2065_v59 }
 0x70c   : >> { %v2068_v62 = vrot.slane %v2067_v61, 2 }
 0x70e   : >> { %v2069_v63 = vadd.f32 %v2068_v62, %v2067_v61 }
 0x710   : >> { %v2070_v0 = vrot.slane %v2069_v63, 1 }
 0x712   : >> { %v2071_v2 = vadd.f32 %v2070_v0, %v2069_v63 }
 0x714   : >> { %5130 = vrcp.f32 %v2071_v2 }
 0x71e   : >> { %v5131_v4 = vpop.eup %5130 }
 0x71f   : >> { %v2073_v5 = vmul.f32 %v5131_v4, %v2071_v2 }
 0x721   : >> { %v2074_v6 = vsub.f32 2.0, %v2073_v5 }
 0x723   : >> { %v2075_v8 = vmul.f32 %v5131_v4, %v2074_v6 }
 0x725   : >> { %v2076_v10 = vmin.f32 %v2075_v8, 1.0 }
 0x727   : >> { %v2077_v11 = vmul.f32 %v5567_v52, %v2076_v10 }
 0x729   : >> { %4833 = vmatmul.mubr.f32.vlgmr.msra.gmra.mrb[6].mxu1 %v2077_v11 }
 0x72a   : >> { %4836 = vmatpush3.msk.msra.mxu1 %vm5298_vm2, %v5216_v39  ;;  %4837 = vmatprep.mubr.msk.f32.mxu1 %vm5213_vm3, %v5214_v19 }
 0x72b   : >> { %4840 = vmatprep.subr.mxu1 %v5214_v19 }
 0x7fc   : >> { %v2144_v12 = vpop.f32.mrb[6].mxu1 }
 0x7fd   : >> { %v4834_v13 = vpop.f32.mrb[7].mxu1  ;;  %4838 = vmatmul.mubr.msk.f32.vlgmr.msra.gmra.mrb[8].mxu1 %vm548_vm5, %v2144_v12 }
 0x7fe   : >> { %4841 = vmatpush3.xpose.msk.msra.mxu1 %vm5298_vm2, %v5216_v39  ;;  %4842 = vmatprep.mubr.msk.f32.mxu1 %vm5213_vm3, %v5214_v19 }
 0x7ff   : >> { %4845 = vmatprep.subr.mxu1 %v5214_v19 }
 0x8d0   : >> { %v2217_v15 = vpop.f32.mrb[8].mxu1 }
 0x8d1   : >> { %5132 = vrcp.f32 %v2217_v15  ;;  %v4839_v16 = vpop.f32.mrb[9].mxu1 }
 0x8db   : >> { %v5133_v17 = vpop.eup %5132 }
 0x8dc   : >> { %v2222_v18 = vmul.f32 %v5133_v17, %v2217_v15 }
 0x8de   : >> { %v2223_v58 = vsub.f32 2.0, %v2222_v18 }
 0x8e0   : >> { %v2224_v3 = vmul.f32 %v5133_v17, %v2223_v58 }
 0x8e2   : >> { %v2225_v21 = vmul.f32 %v5567_v52, %v2224_v3 }
 0x8e4   : >> { %v2226_v22 = vrot.slane %v2225_v21, 4 }
 0x8e6   : >> { %v2227_v23 = vadd.f32 %v2226_v22, %v2225_v21 }
 0x8e8   : >> { %v2228_v24 = vrot.slane %v2227_v23, 2 }
 0x8ea   : >> { %v2229_v26 = vadd.f32 %v2228_v24, %v2227_v23 }
 0x8ec   : >> { %v2230_v9 = vrot.slane %v2229_v26, 1 }
 0x8ee   : >> { %v2231_v27 = vadd.f32 %v2230_v9, %v2229_v26 }
 0x8f0   : >> { %5134 = vrcp.f32 %v2231_v27 }
 0x8fa   : >> { %v5135_v28 = vpop.eup %5134 }
 0x8fb   : >> { %v2233_v29 = vmul.f32 %v5135_v28, %v2231_v27 }
 0x8fd   : >> { %v2234_v31 = vsub.f32 2.0, %v2233_v29 }
 0x8ff   : >> { %v2235_v32 = vmul.f32 %v5135_v28, %v2234_v31 }
 0x901   : >> { %v2236_v14 = vmin.f32 %v2235_v32, 1.0 }
 0x903   : >> { %v2237_v33 = vmul.f32 %v5567_v52, %v2236_v14 }
 0x905   : >> { %4843 = vmatmul.mubr.f32.vlgmr.msra.gmra.mrb[10].mxu1 %v2237_v33 }
 0x906   : >> { %4846 = vmatpush3.msk.msra.mxu1 %vm5298_vm2, %v5216_v39  ;;  %4847 = vmatprep.mubr.msk.f32.mxu1 %vm5213_vm3, %v5214_v19 }
 0x907   : >> { %4850 = vmatprep.subr.mxu1 %v5214_v19 }
 0x9d8   : >> { %v2304_v34 = vpop.f32.mrb[10].mxu1 }
 0x9d9   : >> { %v4844_v36 = vpop.f32.mrb[11].mxu1  ;;  %4848 = vmatmul.mubr.msk.f32.vlgmr.msra.gmra.mrb[12].mxu1 %vm548_vm5, %v2304_v34 }
 0x9da   : >> { %4851 = vmatpush3.xpose.msk.msra.mxu1 %vm5298_vm2, %v5216_v39  ;;  %4852 = vmatprep.mubr.msk.f32.mxu1 %vm5213_vm3, %v5214_v19 }
 0x9db   : >> { %4855 = vmatprep.subr.mxu1 %v5214_v19 }
 0xaac   : >> { %v2377_v37 = vpop.f32.mrb[12].mxu1 }
 0xaad   : >> { %5136 = vrcp.f32 %v2377_v37  ;;  %v4849_v38 = vpop.f32.mrb[13].mxu1 }
 0xab7   : >> { %v5137_v20 = vpop.eup %5136 }
 0xab8   : >> { %v2382_v40 = vmul.f32 %v5137_v20, %v2377_v37 }
 0xaba   : >> { %v2383_v25 = vsub.f32 2.0, %v2382_v40 }
 0xabc   : >> { %v2384_v41 = vmul.f32 %v5137_v20, %v2383_v25 }
 0xabe   : >> { %v2385_v42 = vmul.f32 %v5567_v52, %v2384_v41 }
 0xac0   : >> { %v2386_v44 = vrot.slane %v2385_v42, 4 }
 0xac2   : >> { %v2387_v45 = vadd.f32 %v2386_v44, %v2385_v42 }
 0xac4   : >> { %v2388_v46 = vrot.slane %v2387_v45, 2 }
 0xac6   : >> { %v2389_v47 = vadd.f32 %v2388_v46, %v2387_v45 }
 0xac8   : >> { %v2390_v48 = vrot.slane %v2389_v47, 1 }
 0xaca   : >> { %v2391_v49 = vadd.f32 %v2390_v48, %v2389_v47 }
 0xacc   : >> { %5138 = vrcp.f32 %v2391_v49 }
 0xad6   : >> { %v5139_v50 = vpop.eup %5138 }
 0xad7   : >> { %v2393_v51 = vmul.f32 %v5139_v50, %v2391_v49 }
 0xad9   : >> { %v2394_v30 = vsub.f32 2.0, %v2393_v51 }
 0xadb   : >> { %v2395_v35 = vmul.f32 %v5139_v50, %v2394_v30 }
 0xadd   : >> { %v2396_v43 = vmin.f32 %v2395_v35, 1.0 }
 0xadf   : >> { %v2397_v53 = vmul.f32 %v5567_v52, %v2396_v43 }
 0xae1   : >> { %4853 = vmatmul.mubr.f32.vlgmr.msra.gmra.mrb[14].mxu1 %v2397_v53 }
 0xae2   : >> { %4856 = vmatpush3.msk.msra.mxu1 %vm5298_vm2, %v5216_v39  ;;  %4857 = vmatprep.mubr.msk.f32.mxu1 %vm5213_vm3, %v5214_v19 }
 0xae3   : >> { %4860 = vmatprep.subr.mxu1 %v5214_v19 }
 0xbb4   : >> { %v2464_v54 = vpop.f32.mrb[14].mxu1 }
 0xbb5   : >> { %v4854_v55 = vpop.f32.mrb[15].mxu1  ;;  %4858 = vmatmul.mubr.msk.f32.vlgmr.msra.gmra.mrb[16].mxu1 %vm548_vm5, %v2464_v54 }
 0xbb6   : >> { %4861 = vmatpush3.xpose.msk.msra.mxu1 %vm5298_vm2, %v5216_v39  ;;  %4862 = vmatprep.mubr.msk.f32.mxu1 %vm5213_vm3, %v5214_v19 }
 0xbb7   : >> { %4865 = vmatprep.subr.mxu1 %v5214_v19 }
 0xc88   : >> { %v2537_v56 = vpop.f32.mrb[16].mxu1 }
 0xc89   : >> { %5140 = vrcp.f32 %v2537_v56  ;;  %v4859_v57 = vpop.f32.mrb[17].mxu1 }
 0xc93   : >> { %v5141_v59 = vpop.eup %5140 }
 0xc94   : >> { %v2542_v60 = vmul.f32 %v5141_v59, %v2537_v56 }
 0xc96   : >> { %v2543_v61 = vsub.f32 2.0, %v2542_v60 }
 0xc98   : >> { %v2544_v62 = vmul.f32 %v5141_v59, %v2543_v61 }
 0xc9a   : >> { %v2545_v63 = vmul.f32 %v5567_v52, %v2544_v62 }
 0xc9c   : >> { %v2546_v0 = vrot.slane %v2545_v63, 4 }
 0xc9e   : >> { %v2547_v2 = vadd.f32 %v2546_v0, %v2545_v63 }
 0xca0   : >> { %v2548_v4 = vrot.slane %v2547_v2, 2 }
 0xca2   : >> { %v2549_v5 = vadd.f32 %v2548_v4, %v2547_v2 }
 0xca4   : >> { %v2550_v6 = vrot.slane %v2549_v5, 1 }
 0xca6   : >> { %v2551_v8 = vadd.f32 %v2550_v6, %v2549_v5 }
 0xca8   : >> { %5142 = vrcp.f32 %v2551_v8 }
 0xcb2   : >> { %v5143_v10 = vpop.eup %5142 }
 0xcb3   : >> { %v2553_v11 = vmul.f32 %v5143_v10, %v2551_v8 }
 0xcb5   : >> { %v2554_v12 = vsub.f32 2.0, %v2553_v11 }
 0xcb7   : >> { %v2555_v13 = vmul.f32 %v5143_v10, %v2554_v12 }
 0xcb9   : >> { %v2556_v15 = vmin.f32 %v2555_v13, 1.0 }
 0xcbb   : >> { %v2557_v16 = vmul.f32 %v5567_v52, %v2556_v15 }
 0xcbd   : >> { %4863 = vmatmul.mubr.f32.vlgmr.msra.gmra.mrb[18].mxu1 %v2557_v16 }
 0xcbe   : >> { %4866 = vmatpush3.msk.msra.mxu1 %vm5298_vm2, %v5216_v39  ;;  %4867 = vmatprep.mubr.msk.f32.mxu1 %vm5213_vm3, %v5214_v19 }
 0xcbf   : >> { %4870 = vmatprep.subr.mxu1 %v5214_v19 }
 0xd90   : >> { %v2624_v17 = vpop.f32.mrb[18].mxu1 }
 0xd91   : >> { %v4864_v18 = vpop.f32.mrb[19].mxu1  ;;  %4868 = vmatmul.mubr.msk.f32.vlgmr.msra.gmra.mrb[20].mxu1 %vm548_vm5, %v2624_v17 }
 0xd92   : >> { %4871 = vmatpush3.xpose.msk.msra.mxu1 %vm5298_vm2, %v5216_v39  ;;  %4872 = vmatprep.mubr.msk.f32.mxu1 %vm5213_vm3, %v5214_v19 }
 0xd93   : >> { %4875 = vmatprep.subr.mxu1 %v5214_v19 }
 0xe64   : >> { %v2697_v58 = vpop.f32.mrb[20].mxu1 }
 0xe65   : >> { %5144 = vrcp.f32 %v2697_v58  ;;  %v4869_v3 = vpop.f32.mrb[21].mxu1 }
 0xe6f   : >> { %v5145_v21 = vpop.eup %5144 }
 0xe70   : >> { %v2702_v22 = vmul.f32 %v5145_v21, %v2697_v58 }
 0xe72   : >> { %v2703_v23 = vsub.f32 2.0, %v2702_v22 }
 0xe74   : >> { %v2704_v24 = vmul.f32 %v5145_v21, %v2703_v23 }
 0xe76   : >> { %v2705_v26 = vmul.f32 %v5567_v52, %v2704_v24 }
 0xe78   : >> { %v2706_v9 = vrot.slane %v2705_v26, 4 }
 0xe7a   : >> { %v2707_v27 = vadd.f32 %v2706_v9, %v2705_v26 }
 0xe7c   : >> { %v2708_v28 = vrot.slane %v2707_v27, 2 }
 0xe7e   : >> { %v2709_v29 = vadd.f32 %v2708_v28, %v2707_v27 }
 0xe80   : >> { %v2710_v31 = vrot.slane %v2709_v29, 1 }
 0xe82   : >> { %v2711_v32 = vadd.f32 %v2710_v31, %v2709_v29 }
 0xe84   : >> { %5146 = vrcp.f32 %v2711_v32 }
 0xe8e   : >> { %v5147_v14 = vpop.eup %5146 }
 0xe8f   : >> { %v2713_v33 = vmul.f32 %v5147_v14, %v2711_v32 }
 0xe91   : >> { %v2714_v34 = vsub.f32 2.0, %v2713_v33 }
 0xe93   : >> { %v2715_v36 = vmul.f32 %v5147_v14, %v2714_v34 }
 0xe95   : >> { %v2716_v37 = vmin.f32 %v2715_v36, 1.0 }
 0xe97   : >> { %v2717_v38 = vmul.f32 %v5567_v52, %v2716_v37 }
 0xe99   : >> { %4873 = vmatmul.mubr.f32.vlgmr.msra.gmra.mrb[22].mxu1 %v2717_v38 }
 0xe9a   : >> { %4876 = vmatpush3.msk.msra.mxu1 %vm5298_vm2, %v5216_v39  ;;  %4877 = vmatprep.mubr.msk.f32.mxu1 %vm5213_vm3, %v5214_v19 }
 0xe9b   : >> { %4880 = vmatprep.subr.mxu1 %v5214_v19 }
 0xf6c   : >> { %v2784_v20 = vpop.f32.mrb[22].mxu1 }
 0xf6d   : >> { %v4874_v40 = vpop.f32.mrb[23].mxu1  ;;  %4878 = vmatmul.mubr.msk.f32.vlgmr.msra.gmra.mrb[24].mxu1 %vm548_vm5, %v2784_v20 }
 0xf6e   : >> { %4881 = vmatpush3.xpose.msk.msra.mxu1 %vm5298_vm2, %v5216_v39  ;;  %4882 = vmatprep.mubr.msk.f32.mxu1 %vm5213_vm3, %v5214_v19 }
 0xf6f   : >> { %4885 = vmatprep.subr.mxu1 %v5214_v19 }
0x1040   : >> { %v2857_v25 = vpop.f32.mrb[24].mxu1 }
0x1041   : >> { %5148 = vrcp.f32 %v2857_v25  ;;  %v4879_v41 = vpop.f32.mrb[25].mxu1 }
0x104b   : >> { %v5149_v42 = vpop.eup %5148 }
0x104c   : >> { %v2862_v44 = vmul.f32 %v5149_v42, %v2857_v25 }
0x104e   : >> { %v2863_v45 = vsub.f32 2.0, %v2862_v44 }
0x1050   : >> { %v2864_v46 = vmul.f32 %v5149_v42, %v2863_v45 }
0x1052   : >> { %v2865_v47 = vmul.f32 %v5567_v52, %v2864_v46 }
0x1054   : >> { %v2866_v48 = vrot.slane %v2865_v47, 4 }
0x1056   : >> { %v2867_v49 = vadd.f32 %v2866_v48, %v2865_v47 }
0x1058   : >> { %v2868_v50 = vrot.slane %v2867_v49, 2 }
0x105a   : >> { %v2869_v51 = vadd.f32 %v2868_v50, %v2867_v49 }
0x105c   : >> { %v2870_v30 = vrot.slane %v2869_v51, 1 }
0x105e   : >> { %v2871_v35 = vadd.f32 %v2870_v30, %v2869_v51 }
0x1060   : >> { %5150 = vrcp.f32 %v2871_v35 }
0x106a   : >> { %v5151_v43 = vpop.eup %5150 }
0x106b   : >> { %v2873_v53 = vmul.f32 %v5151_v43, %v2871_v35 }
0x106d   : >> { %v2874_v54 = vsub.f32 2.0, %v2873_v53 }
0x106f   : >> { %v2875_v55 = vmul.f32 %v5151_v43, %v2874_v54 }
0x1071   : >> { %v2876_v56 = vmin.f32 %v2875_v55, 1.0 }
0x1073   : >> { %v2877_v57 = vmul.f32 %v5567_v52, %v2876_v56 }
0x1075   : >> { %4883 = vmatmul.mubr.f32.vlgmr.msra.gmra.mrb[26].mxu1 %v2877_v57 }
0x1076   : >> { %4886 = vmatpush3.msk.msra.mxu1 %vm5298_vm2, %v5216_v39  ;;  %4887 = vmatprep.mubr.msk.f32.mxu1 %vm5213_vm3, %v5214_v19 }
0x1077   : >> { %4890 = vmatprep.subr.mxu1 %v5214_v19 }
0x1148   : >> { %v2944_v59 = vpop.f32.mrb[26].mxu1 }
0x1149   : >> { %v4884_v60 = vpop.f32.mrb[27].mxu1  ;;  %4888 = vmatmul.mubr.msk.f32.vlgmr.msra.gmra.mrb[28].mxu1 %vm548_vm5, %v2944_v59 }
0x114a   : >> { %4891 = vmatpush3.xpose.msk.msra.mxu1 %vm5298_vm2, %v5216_v39  ;;  %4892 = vmatprep.mubr.msk.f32.mxu1 %vm5213_vm3, %v5214_v19 }
0x114b   : >> { %4895 = vmatprep.subr.mxu1 %v5214_v19 }
0x121c   : >> { %v3017_v61 = vpop.f32.mrb[28].mxu1 }
0x121d   : >> { %5152 = vrcp.f32 %v3017_v61  ;;  %v4889_v62 = vpop.f32.mrb[29].mxu1 }
0x1227   : >> { %v5153_v63 = vpop.eup %5152 }
0x1228   : >> { %v3022_v0 = vmul.f32 %v5153_v63, %v3017_v61 }
0x122a   : >> { %v3023_v2 = vsub.f32 2.0, %v3022_v0 }
0x122c   : >> { %v3024_v4 = vmul.f32 %v5153_v63, %v3023_v2 }
0x122e   : >> { %v3025_v5 = vmul.f32 %v5567_v52, %v3024_v4 }
0x1230   : >> { %v3026_v6 = vrot.slane %v3025_v5, 4 }
0x1232   : >> { %v3027_v8 = vadd.f32 %v3026_v6, %v3025_v5 }
0x1234   : >> { %v3028_v10 = vrot.slane %v3027_v8, 2 }
0x1236   : >> { %v3029_v11 = vadd.f32 %v3028_v10, %v3027_v8 }
0x1238   : >> { %v3030_v12 = vrot.slane %v3029_v11, 1 }
0x123a   : >> { %v3031_v13 = vadd.f32 %v3030_v12, %v3029_v11 }
0x123c   : >> { %5154 = vrcp.f32 %v3031_v13 }
0x1246   : >> { %v5155_v15 = vpop.eup %5154 }
0x1247   : >> { %v3033_v16 = vmul.f32 %v5155_v15, %v3031_v13 }
0x1249   : >> { %v3034_v17 = vsub.f32 2.0, %v3033_v16 }
0x124b   : >> { %v3035_v18 = vmul.f32 %v5155_v15, %v3034_v17 }
0x124d   : >> { %v3036_v58 = vmin.f32 %v3035_v18, 1.0 }
0x124f   : >> { %v3037_v3 = vmul.f32 %v5567_v52, %v3036_v58 }
0x1251   : >> { %4893 = vmatmul.mubr.f32.vlgmr.msra.gmra.mrb[30].mxu1 %v3037_v3 }
0x1252   : >> { %4896 = vmatpush3.msk.msra.mxu1 %vm5298_vm2, %v5216_v39  ;;  %4897 = vmatprep.mubr.msk.f32.mxu1 %vm5213_vm3, %v5214_v19 }
0x1253   : >> { %4905 = vmatprep.subr.mxu1 %v5214_v19 }
0x1324   : >> { %v3104_v21 = vpop.f32.mrb[30].mxu1 }
0x1325   : >> { %v4894_v22 = vpop.f32.mrb[31].mxu1  ;;  %4898 = vmatmul.mubr.msk.f32.vlgmr.msra.gmra.mrb[32].mxu1 %vm548_vm5, %v3104_v21 }
0x1326   : >> { %4906 = vmatpush3.msk.msra.mxu1 %vm5298_vm2, %v5216_v39  ;;  %4907 = vmatprep.mubr.msk.f32.mxu1 %vm5213_vm3, %v5214_v19 }
0x1327   : >> { %4915 = vmatprep.subr.mxu1 %v5214_v19 }
0x13f8   : >> { %v3177_v23 = vpop.f32.mrb[32].mxu1 }
0x13f9   : >> { %5156 = vrcp.f32 %v3177_v23  ;;  %v4899_v24 = vpop.f32.mrb[33].mxu1 }
0x1403   : >> { %v5157_v26 = vpop.eup %5156 }
0x1404   : >> { %v3182_v9 = vmul.f32 %v5157_v26, %v3177_v23 }
0x1406   : >> { %v3183_v27 = vsub.f32 2.0, %v3182_v9 }
0x1408   : >> { %v3184_v28 = vmul.f32 %v5157_v26, %v3183_v27 }
0x140a   : >> { %v3185_v29 = vmul.f32 %v5567_v52, %v3184_v28 }
0x140c   : >> { %v3186_v31 = vrot.slane %v3185_v29, 4 }
0x140e   : >> { %v3187_v32 = vadd.f32 %v3186_v31, %v3185_v29 }
0x1410   : >> { %v3188_v14 = vrot.slane %v3187_v32, 2 }
0x1412   : >> { %v3189_v33 = vadd.f32 %v3188_v14, %v3187_v32 }
0x1414   : >> { %v3190_v34 = vrot.slane %v3189_v33, 1 }
0x1416   : >> { %v3191_v36 = vadd.f32 %v3190_v34, %v3189_v33 }
0x1418   : >> { %5158 = vrcp.f32 %v3191_v36 }
0x1422   : >> { %v5159_v37 = vpop.eup %5158 }
0x1423   : >> { %v3193_v38 = vmul.f32 %v5159_v37, %v3191_v36 }
0x1425   : >> { %v3194_v20 = vsub.f32 2.0, %v3193_v38 }
0x1427   : >> { %v3195_v40 = vmul.f32 %v5159_v37, %v3194_v20 }
0x1429   : >> { %v3196_v25 = vmin.f32 %v3195_v40, 1.0 }
0x142b   : >> { %v3197_v41 = vmul.f32 %v5567_v52, %v3196_v25 }
0x142d   : >> { %4903 = vmatmul.mubr.f32.vlgmr.msra.gmra.mrb[4].mxu0 %v3197_v41 }
0x142e   : >> { %4911 = vmatpush3.xpose.msk.msra.mxu0 %vm5298_vm2, %v5216_v39  ;;  %4912 = vmatprep.mubr.msk.f32.mxu0 %vm5213_vm3, %v5214_v19 }
0x142f   : >> { %4920 = vmatprep.subr.mxu0 %v5214_v19 }
0x1500   : >> { %v3264_v42 = vpop.f32.mrb[4].mxu0 }
0x1501   : >> { %v4904_v44 = vpop.f32.mrb[5].mxu0  ;;  %4908 = vmatmul.mubr.msk.f32.vlgmr.msra.gmra.mrb[34].mxu1 %vm548_vm5, %v3264_v42 }
0x1502   : >> { %4916 = vmatpush3.msk.msra.mxu1 %vm5298_vm2, %v5216_v39  ;;  %4917 = vmatprep.mubr.msk.f32.mxu1 %vm5213_vm3, %v5214_v19 }
0x1503   : >> { %4925 = vmatprep.subr.mxu1 %v5214_v19 }
0x15d4   : >> { %v3337_v45 = vpop.f32.mrb[34].mxu1 }
0x15d5   : >> { %5160 = vrcp.f32 %v3337_v45  ;;  %v4909_v46 = vpop.f32.mrb[35].mxu1 }
0x15df   : >> { %v5161_v47 = vpop.eup %5160 }
0x15e0   : >> { %v3342_v48 = vmul.f32 %v5161_v47, %v3337_v45 }
0x15e2   : >> { %v3343_v49 = vsub.f32 2.0, %v3342_v48 }
0x15e4   : >> { %v3344_v50 = vmul.f32 %v5161_v47, %v3343_v49 }
0x15e6   : >> { %v3345_v51 = vmul.f32 %v5567_v52, %v3344_v50 }
0x15e8   : >> { %v3346_v30 = vrot.slane %v3345_v51, 4 }
0x15ea   : >> { %v3347_v35 = vadd.f32 %v3346_v30, %v3345_v51 }
0x15ec   : >> { %v3348_v43 = vrot.slane %v3347_v35, 2 }
0x15ee   : >> { %v3349_v53 = vadd.f32 %v3348_v43, %v3347_v35 }
0x15f0   : >> { %v3350_v54 = vrot.slane %v3349_v53, 1 }
0x15f2   : >> { %v3351_v55 = vadd.f32 %v3350_v54, %v3349_v53 }
0x15f4   : >> { %5162 = vrcp.f32 %v3351_v55 }
0x15fe   : >> { %v5163_v56 = vpop.eup %5162 }
0x15ff   : >> { %v3353_v57 = vmul.f32 %v5163_v56, %v3351_v55 }
0x1601   : >> { %v3354_v59 = vsub.f32 2.0, %v3353_v57 }
0x1603   : >> { %v3355_v60 = vmul.f32 %v5163_v56, %v3354_v59 }
0x1605   : >> { %v3356_v61 = vmin.f32 %v3355_v60, 1.0 }
0x1607   : >> { %v3357_v62 = vmul.f32 %v5567_v52, %v3356_v61 }
0x1609   : >> { %4913 = vmatmul.mubr.f32.vlgmr.msra.gmra.mrb[6].mxu0 %v3357_v62 }
0x160a   : >> { %4921 = vmatpush3.xpose.msk.msra.mxu0 %vm5298_vm2, %v5216_v39  ;;  %4922 = vmatprep.mubr.msk.f32.mxu0 %vm5213_vm3, %v5214_v19 }
0x160b   : >> { %4930 = vmatprep.subr.mxu0 %v5214_v19 }
0x16dc   : >> { %v3424_v63 = vpop.f32.mrb[6].mxu0 }
0x16dd   : >> { %v4914_v0 = vpop.f32.mrb[7].mxu0  ;;  %4918 = vmatmul.mubr.msk.f32.vlgmr.msra.gmra.mrb[36].mxu1 %vm548_vm5, %v3424_v63 }
0x16de   : >> { %4926 = vmatpush3.msk.msra.mxu1 %vm5298_vm2, %v5216_v39  ;;  %4927 = vmatprep.mubr.msk.f32.mxu1 %vm5213_vm3, %v5214_v19 }
0x16df   : >> { %4935 = vmatprep.subr.mxu1 %v5214_v19 }
0x17b0   : >> { %v3497_v2 = vpop.f32.mrb[36].mxu1 }
0x17b1   : >> { %5164 = vrcp.f32 %v3497_v2  ;;  %v4919_v4 = vpop.f32.mrb[37].mxu1 }
0x17bb   : >> { %v5165_v5 = vpop.eup %5164 }
0x17bc   : >> { %v3502_v6 = vmul.f32 %v5165_v5, %v3497_v2 }
0x17be   : >> { %v3503_v8 = vsub.f32 2.0, %v3502_v6 }
0x17c0   : >> { %v3504_v10 = vmul.f32 %v5165_v5, %v3503_v8 }
0x17c2   : >> { %v3505_v11 = vmul.f32 %v5567_v52, %v3504_v10 }
0x17c4   : >> { %v3506_v12 = vrot.slane %v3505_v11, 4 }
0x17c6   : >> { %v3507_v13 = vadd.f32 %v3506_v12, %v3505_v11 }
0x17c8   : >> { %v3508_v15 = vrot.slane %v3507_v13, 2 }
0x17ca   : >> { %v3509_v16 = vadd.f32 %v3508_v15, %v3507_v13 }
0x17cc   : >> { %v3510_v17 = vrot.slane %v3509_v16, 1 }
0x17ce   : >> { %v3511_v18 = vadd.f32 %v3510_v17, %v3509_v16 }
0x17d0   : >> { %5166 = vrcp.f32 %v3511_v18 }
0x17da   : >> { %v5167_v58 = vpop.eup %5166 }
0x17db   : >> { %v3513_v3 = vmul.f32 %v5167_v58, %v3511_v18 }
0x17dd   : >> { %v3514_v21 = vsub.f32 2.0, %v3513_v3 }
0x17df   : >> { %v3515_v22 = vmul.f32 %v5167_v58, %v3514_v21 }
0x17e1   : >> { %v3516_v23 = vmin.f32 %v3515_v22, 1.0 }
0x17e3   : >> { %v3517_v24 = vmul.f32 %v5567_v52, %v3516_v23 }
0x17e5   : >> { %4923 = vmatmul.mubr.f32.vlgmr.msra.gmra.mrb[8].mxu0 %v3517_v24 }
0x17e6   : >> { %4931 = vmatpush3.xpose.msk.msra.mxu0 %vm5298_vm2, %v5216_v39  ;;  %4932 = vmatprep.mubr.msk.f32.mxu0 %vm5213_vm3, %v5214_v19 }
0x17e7   : >> { %4940 = vmatprep.subr.mxu0 %v5214_v19 }
0x18b8   : >> { %v3584_v26 = vpop.f32.mrb[8].mxu0 }
0x18b9   : >> { %v4924_v9 = vpop.f32.mrb[9].mxu0  ;;  %4928 = vmatmul.mubr.msk.f32.vlgmr.msra.gmra.mrb[38].mxu1 %vm548_vm5, %v3584_v26 }
0x18ba   : >> { %4936 = vmatpush3.msk.msra.mxu1 %vm5298_vm2, %v5216_v39  ;;  %4937 = vmatprep.mubr.msk.f32.mxu1 %vm5213_vm3, %v5214_v19 }
0x18bb   : >> { %4945 = vmatprep.subr.mxu1 %v5214_v19 }
0x198c   : >> { %v3657_v27 = vpop.f32.mrb[38].mxu1 }
0x198d   : >> { %5168 = vrcp.f32 %v3657_v27  ;;  %v4929_v28 = vpop.f32.mrb[39].mxu1 }
0x1997   : >> { %v5169_v29 = vpop.eup %5168 }
0x1998   : >> { %v3662_v31 = vmul.f32 %v5169_v29, %v3657_v27 }
0x199a   : >> { %v3663_v32 = vsub.f32 2.0, %v3662_v31 }
0x199c   : >> { %v3664_v14 = vmul.f32 %v5169_v29, %v3663_v32 }
0x199e   : >> { %v3665_v33 = vmul.f32 %v5567_v52, %v3664_v14 }
0x19a0   : >> { %v3666_v34 = vrot.slane %v3665_v33, 4 }
0x19a2   : >> { %v3667_v36 = vadd.f32 %v3666_v34, %v3665_v33 }
0x19a4   : >> { %v3668_v37 = vrot.slane %v3667_v36, 2 }
0x19a6   : >> { %v3669_v38 = vadd.f32 %v3668_v37, %v3667_v36 }
0x19a8   : >> { %v3670_v20 = vrot.slane %v3669_v38, 1 }
0x19aa   : >> { %v3671_v40 = vadd.f32 %v3670_v20, %v3669_v38 }
0x19ac   : >> { %5170 = vrcp.f32 %v3671_v40 }
0x19b6   : >> { %v5171_v25 = vpop.eup %5170 }
0x19b7   : >> { %v3673_v41 = vmul.f32 %v5171_v25, %v3671_v40 }
0x19b9   : >> { %v3674_v42 = vsub.f32 2.0, %v3673_v41 }
0x19bb   : >> { %v3675_v44 = vmul.f32 %v5171_v25, %v3674_v42 }
0x19bd   : >> { %v3676_v45 = vmin.f32 %v3675_v44, 1.0 }
0x19bf   : >> { %v3677_v46 = vmul.f32 %v5567_v52, %v3676_v45 }
0x19c1   : >> { %4933 = vmatmul.mubr.f32.vlgmr.msra.gmra.mrb[10].mxu0 %v3677_v46 }
0x19c2   : >> { %4941 = vmatpush3.xpose.msk.msra.mxu0 %vm5298_vm2, %v5216_v39  ;;  %4942 = vmatprep.mubr.msk.f32.mxu0 %vm5213_vm3, %v5214_v19 }
0x19c3   : >> { %4950 = vmatprep.subr.mxu0 %v5214_v19 }
0x1a94   : >> { %v3744_v47 = vpop.f32.mrb[10].mxu0 }
0x1a95   : >> { %v4934_v48 = vpop.f32.mrb[11].mxu0  ;;  %4938 = vmatmul.mubr.msk.f32.vlgmr.msra.gmra.mrb[40].mxu1 %vm548_vm5, %v3744_v47 }
0x1a96   : >> { %4946 = vmatpush3.msk.msra.mxu1 %vm5298_vm2, %v5216_v39  ;;  %4947 = vmatprep.mubr.msk.f32.mxu1 %vm5213_vm3, %v5214_v19 }
0x1a97   : >> { %4955 = vmatprep.subr.mxu1 %v5214_v19 }
0x1b68   : >> { %v3817_v49 = vpop.f32.mrb[40].mxu1 }
0x1b69   : >> { %5172 = vrcp.f32 %v3817_v49  ;;  %v4939_v50 = vpop.f32.mrb[41].mxu1 }
0x1b73   : >> { %v5173_v51 = vpop.eup %5172 }
0x1b74   : >> { %v3822_v30 = vmul.f32 %v5173_v51, %v3817_v49 }
0x1b76   : >> { %v3823_v35 = vsub.f32 2.0, %v3822_v30 }
0x1b78   : >> { %v3824_v43 = vmul.f32 %v5173_v51, %v3823_v35 }
0x1b7a   : >> { %v3825_v53 = vmul.f32 %v5567_v52, %v3824_v43 }
0x1b7c   : >> { %v3826_v54 = vrot.slane %v3825_v53, 4 }
0x1b7e   : >> { %v3827_v55 = vadd.f32 %v3826_v54, %v3825_v53 }
0x1b80   : >> { %v3828_v56 = vrot.slane %v3827_v55, 2 }
0x1b82   : >> { %v3829_v57 = vadd.f32 %v3828_v56, %v3827_v55 }
0x1b84   : >> { %v3830_v59 = vrot.slane %v3829_v57, 1 }
0x1b86   : >> { %v3831_v60 = vadd.f32 %v3830_v59, %v3829_v57 }
0x1b88   : >> { %5174 = vrcp.f32 %v3831_v60 }
0x1b92   : >> { %v5175_v61 = vpop.eup %5174 }
0x1b93   : >> { %v3833_v62 = vmul.f32 %v5175_v61, %v3831_v60 }
0x1b95   : >> { %v3834_v63 = vsub.f32 2.0, %v3833_v62 }
0x1b97   : >> { %v3835_v0 = vmul.f32 %v5175_v61, %v3834_v63 }
0x1b99   : >> { %v3836_v2 = vmin.f32 %v3835_v0, 1.0 }
0x1b9b   : >> { %v3837_v4 = vmul.f32 %v5567_v52, %v3836_v2 }
0x1b9d   : >> { %4943 = vmatmul.mubr.f32.vlgmr.msra.gmra.mrb[12].mxu0 %v3837_v4 }
0x1b9e   : >> { %4951 = vmatpush3.xpose.msk.msra.mxu0 %vm5298_vm2, %v5216_v39  ;;  %4952 = vmatprep.mubr.msk.f32.mxu0 %vm5213_vm3, %v5214_v19 }
0x1b9f   : >> { %4960 = vmatprep.subr.mxu0 %v5214_v19 }
0x1c70   : >> { %v3904_v5 = vpop.f32.mrb[12].mxu0 }
0x1c71   : >> { %v4944_v6 = vpop.f32.mrb[13].mxu0  ;;  %4948 = vmatmul.mubr.msk.f32.vlgmr.msra.gmra.mrb[42].mxu1 %vm548_vm5, %v3904_v5 }
0x1c72   : >> { %4956 = vmatpush3.msk.msra.mxu1 %vm5298_vm2, %v5216_v39  ;;  %4957 = vmatprep.mubr.msk.f32.mxu1 %vm5213_vm3, %v5214_v19 }
0x1c73   : >> { %4965 = vmatprep.subr.mxu1 %v5214_v19 }
0x1d44   : >> { %v3977_v8 = vpop.f32.mrb[42].mxu1 }
0x1d45   : >> { %5176 = vrcp.f32 %v3977_v8  ;;  %v4949_v10 = vpop.f32.mrb[43].mxu1 }
0x1d4f   : >> { %v5177_v11 = vpop.eup %5176 }
0x1d50   : >> { %v3982_v12 = vmul.f32 %v5177_v11, %v3977_v8 }
0x1d52   : >> { %v3983_v13 = vsub.f32 2.0, %v3982_v12 }
0x1d54   : >> { %v3984_v15 = vmul.f32 %v5177_v11, %v3983_v13 }
0x1d56   : >> { %v3985_v16 = vmul.f32 %v5567_v52, %v3984_v15 }
0x1d58   : >> { %v3986_v17 = vrot.slane %v3985_v16, 4 }
0x1d5a   : >> { %v3987_v18 = vadd.f32 %v3986_v17, %v3985_v16 }
0x1d5c   : >> { %v3988_v58 = vrot.slane %v3987_v18, 2 }
0x1d5e   : >> { %v3989_v3 = vadd.f32 %v3988_v58, %v3987_v18 }
0x1d60   : >> { %v3990_v21 = vrot.slane %v3989_v3, 1 }
0x1d62   : >> { %v3991_v22 = vadd.f32 %v3990_v21, %v3989_v3 }
0x1d64   : >> { %5178 = vrcp.f32 %v3991_v22 }
0x1d6e   : >> { %v5179_v23 = vpop.eup %5178 }
0x1d6f   : >> { %v3993_v24 = vmul.f32 %v5179_v23, %v3991_v22 }
0x1d71   : >> { %v3994_v26 = vsub.f32 2.0, %v3993_v24 }
0x1d73   : >> { %v3995_v9 = vmul.f32 %v5179_v23, %v3994_v26 }
0x1d75   : >> { %v3996_v27 = vmin.f32 %v3995_v9, 1.0 }
0x1d77   : >> { %v3997_v28 = vmul.f32 %v5567_v52, %v3996_v27 }
0x1d79   : >> { %4953 = vmatmul.mubr.f32.vlgmr.msra.gmra.mrb[14].mxu0 %v3997_v28 }
0x1d7a   : >> { %4961 = vmatpush3.xpose.msk.msra.mxu0 %vm5298_vm2, %v5216_v39  ;;  %4962 = vmatprep.mubr.msk.f32.mxu0 %vm5213_vm3, %v5214_v19 }
0x1e4c   : >> { %v4064_v29 = vpop.f32.mrb[14].mxu0 }
0x1e4d   : >> { %v4954_v31 = vpop.f32.mrb[15].mxu0  ;;  %4958 = vmatmul.mubr.msk.f32.vlgmr.msra.gmra.mrb[44].mxu1 %vm548_vm5, %v4064_v29 }
0x1e4e   : >> { %4966 = vmatpush3.msk.msra.mxu1 %vm5298_vm2, %v5216_v39  ;;  %4967 = vmatprep.mubr.msk.f32.mxu1 %vm5213_vm3, %v5214_v19 }
0x1f20   : >> { %v4137_v32 = vpop.f32.mrb[44].mxu1 }
0x1f21   : >> { %5180 = vrcp.f32 %v4137_v32  ;;  %v4959_v14 = vpop.f32.mrb[45].mxu1 }
0x1f2b   : >> { %v5181_v33 = vpop.eup %5180 }
0x1f2c   : >> { %v4142_v34 = vmul.f32 %v5181_v33, %v4137_v32 }
0x1f2e   : >> { %v4143_v36 = vsub.f32 2.0, %v4142_v34 }
0x1f30   : >> { %v4144_v37 = vmul.f32 %v5181_v33, %v4143_v36 }
0x1f32   : >> { %v4145_v38 = vmul.f32 %v5567_v52, %v4144_v37 }
0x1f34   : >> { %v4146_v20 = vrot.slane %v4145_v38, 4 }
0x1f36   : >> { %v4147_v40 = vadd.f32 %v4146_v20, %v4145_v38 }
0x1f38   : >> { %v4148_v25 = vrot.slane %v4147_v40, 2 }
0x1f3a   : >> { %v4149_v41 = vadd.f32 %v4148_v25, %v4147_v40 }
0x1f3c   : >> { %v4150_v42 = vrot.slane %v4149_v41, 1 }
0x1f3e   : >> { %v4151_v44 = vadd.f32 %v4150_v42, %v4149_v41 }
0x1f40   : >> { %5182 = vrcp.f32 %v4151_v44 }
0x1f4a   : >> { %v5183_v39 = vpop.eup %5182 }
0x1f4b   : >> { %v4153_v45 = vmul.f32 %v5183_v39, %v4151_v44 }
0x1f4d   : >> { %v4154_v46 = vsub.f32 2.0, %v4153_v45 }
0x1f4f   : >> { %v4155_v19 = vmul.f32 %v5183_v39, %v4154_v46 }
0x1f51   : >> { %v4156_v47 = vmin.f32 %v4155_v19, 1.0 }
0x1f53   : >> { %v4157_v48 = vmul.f32 %v5567_v52, %v4156_v47 }
0x1f55   : >> { %4963 = vmatmul.mubr.f32.vlgmr.msra.gmra.mrb[16].mxu0 %v4157_v48 }
0x2028   : >> { %v4224_v49 = vpop.f32.mrb[16].mxu0 }
0x2029   : >> { %v4964_v50 = vpop.f32.mrb[17].mxu0  ;;  %4968 = vmatmul.mubr.msk.f32.vlgmr.msra.gmra.mrb[46].mxu1 %vm548_vm5, %v4224_v49 }
0x20fc   : >> { %v4297_v51 = vpop.f32.mrb[46].mxu1 }
0x20fd   : >> { %5184 = vrcp.f32 %v4297_v51  ;;  %v4969_v30 = vpop.f32.mrb[47].mxu1 }
0x2107   : >> { %v5185_v35 = vpop.eup %5184 }
0x2108   : >> { %v4302_v43 = vmul.f32 %v5185_v35, %v4297_v51 }
0x210a   : >> { %v4303_v53 = vsub.f32 2.0, %v4302_v43 }
0x210c   : >> { %v4304_v54 = vmul.f32 %v5185_v35, %v4303_v53 }
0x210e   : >> { %v4305_v55 = vmul.f32 %v5567_v52, %v4304_v54 }
0x2110   : >> { %v4306_v56 = vrot.slane %v4305_v55, 4 }
0x2112   : >> { %v4307_v57 = vadd.f32 %v4306_v56, %v4305_v55 }
0x2114   : >> { %v4308_v59 = vrot.slane %v4307_v57, 2 }
0x2116   : >> { %v4309_v60 = vadd.f32 %v4308_v59, %v4307_v57 }
0x2118   : >> { %v4310_v61 = vrot.slane %v4309_v60, 1 }
0x211a   : >> { %v4311_v62 = vadd.f32 %v4310_v61, %v4309_v60 }
0x211c   : >> { %5186 = vrcp.f32 %v4311_v62 }
0x2126   : >> { %v5187_v63 = vpop.eup %5186 }
0x2127   : >> { %v4313_v0 = vmul.f32 %v5187_v63, %v4311_v62 }
0x2129   : >> { %v4314_v2 = vsub.f32 2.0, %v4313_v0 }
0x212b   : >> { %v4315_v4 = vmul.f32 %v5187_v63, %v4314_v2  ;;  %365 = sbr.rel (!%p363_p5) target bundleno = 19 (0x13), region = 110 }
0x212d   : >> { %v4316_v5 = vmin.f32 %v4315_v4, 1.0 }
0x212f   : >> { %v4317_v8 = vmul.f32 %v4316_v5, %v4305_v55  }
0x2131   : >> { %v5802_v6 = vmov %v4317_v8  ;;  %4318 = vst [vmem:[%s347_s26] sm:$0xff] (%p363_p5), %v4317_v8 }
0x2132 PF: > { %s16_s21 = sadd.s32 1, %s5202_s21  }
0x2133   : > { %p13_p6 = scmp.ge.s32.totalorder %s16_s21, 4  }
0x2135   :  { %15 = sbr.rel (!%p13_p6) target bundleno = 1 (0x1), region = 121 }

</bundles_post_ra>
